<compile_context>
chip_gen: v5e
topology: v5e:2x2
jax: 0.10.0
libtpu: 0.0.40
codegen_flags: <defaults>
</compile_context>

<pallas_src>
import math

import jax
import jax.numpy as jnp
from jax.experimental import pallas as pl
from jax.experimental.pallas import tpu as pltpu

# ---- model dimensions (small, consistent with a tiny causal LM) -----------
VOCAB = 64
SEQ = 8
HIDDEN = 32
FFN = 64
BATCH = 2

LANE = 128  # logits last dim is padded up to a multiple of this


def _ternary(w):
    """TernaryQuantization.forward: clip(round(w / mean(|w|)), -1, 1)."""
    mean_abs = jnp.mean(jnp.abs(w))
    # NOTE: like the PyTorch reference, no guard for an all-zero tensor.
    return jnp.clip(jnp.round(w / mean_abs), -1.0, 1.0)


def _layer_norm(z, eps=1e-5):
    mu = jnp.mean(z, axis=-1, keepdims=True)
    var = jnp.mean((z - mu) ** 2, axis=-1, keepdims=True)
    return (z - mu) * jax.lax.rsqrt(var + eps)


def _fused_forward_kernel(ids_ref, bias_ref, emb_ref, wq_ref, wk_ref, wv_ref,
                          wo_ref, w1_ref, w2_ref, o_ref):
    t = ids_ref.shape[0]            # B * S, flattened batch on sublanes
    h, v = emb_ref.shape            # embedding passed pre-transposed (H, V)

    # ---- QuantizedTransformer.forward step 1: quantize every parameter ----
    emb_q = _ternary(emb_ref[...])  # (H, V)
    wq = _ternary(wq_ref[...])      # (H, H)
    wk = _ternary(wk_ref[...])
    wv = _ternary(wv_ref[...])
    wo = _ternary(wo_ref[...])
    w1 = _ternary(w1_ref[...])      # (H, F)
    w2 = _ternary(w2_ref[...])      # (F, H)

    # ---- embedding lookup as a one-hot matmul (no gather, no transpose) ----
    ids = ids_ref[...]                                           # (T, 1) int32
    vocab_ids = jax.lax.broadcasted_iota(jnp.int32, (t, v), 1)   # (T, V)
    one_hot = (ids == vocab_ids).astype(jnp.float32)             # (T, V)
    # contract the V axes of one_hot (T,V) and emb_q (H,V)  ->  (T, H)
    x = jax.lax.dot_general(one_hot, emb_q, (((1,), (1,)), ((), ())),
                            preferred_element_type=jnp.float32)

    # ---- attention (single head, head_dim == H), pre-LN, causal ----
    h_ln = _layer_norm(x)
    q = jnp.dot(h_ln, wq, preferred_element_type=jnp.float32)
    k = jnp.dot(h_ln, wk, preferred_element_type=jnp.float32)
    vv = jnp.dot(h_ln, wv, preferred_element_type=jnp.float32)

    # scores[i, j] = q[i] . k[j] / sqrt(H)   (contract H, no explicit k.T)
    scores = jax.lax.dot_general(q, k, (((1,), (1,)), ((), ())),
                                 preferred_element_type=jnp.float32)
    scores = scores * (1.0 / math.sqrt(h)) + bias_ref[...]       # (T, T)

    m = jnp.max(scores, axis=-1, keepdims=True)
    p = jnp.exp(scores - m)
    p = p * pl.reciprocal(jnp.sum(p, axis=-1, keepdims=True), approx=True)

    attn = jnp.dot(p, vv, preferred_element_type=jnp.float32)    # (T, H)
    attn = jnp.dot(attn, wo, preferred_element_type=jnp.float32)
    x = x + attn

    # ---- MLP (pre-LN) ----
    h2 = _layer_norm(x)
    mlp = jnp.dot(h2, w1, preferred_element_type=jnp.float32)    # (T, F)
    # TODO(synk): PyTorch nn.GELU defaults to exact (erf) GELU; the synthetic
    # model here uses the tanh approximation (GPT-2 style "gelu_new").
    mlp = jax.nn.gelu(mlp, approximate=True)
    mlp = jnp.dot(mlp, w2, preferred_element_type=jnp.float32)   # (T, H)
    x = x + mlp

    # ---- tied LM head: logits = x @ E   (E already (H, V), no transpose) ----
    logits = jnp.dot(x, emb_q, preferred_element_type=jnp.float32)  # (T, V)

    # lane-dense store: pad V up to the 128-lane output width with zeros.
    pad = o_ref.shape[1] - v
    if pad > 0:
        logits = jnp.concatenate(
            [logits, jnp.zeros((t, pad), jnp.float32)], axis=1)
    o_ref[...] = logits


def init_params(key):
    ks = jax.random.split(key, 7)
    scale = 0.02
    return {
        "emb": jax.random.normal(ks[0], (VOCAB, HIDDEN), jnp.float32) * scale,
        "wq": jax.random.normal(ks[1], (HIDDEN, HIDDEN), jnp.float32) * scale,
        "wk": jax.random.normal(ks[2], (HIDDEN, HIDDEN), jnp.float32) * scale,
        "wv": jax.random.normal(ks[3], (HIDDEN, HIDDEN), jnp.float32) * scale,
        "wo": jax.random.normal(ks[4], (HIDDEN, HIDDEN), jnp.float32) * scale,
        "w1": jax.random.normal(ks[5], (HIDDEN, FFN), jnp.float32) * scale,
        "w2": jax.random.normal(ks[6], (FFN, HIDDEN), jnp.float32) * scale,
    }


@jax.jit
def quantized_transformer_forward(params, input_ids):
    """QuantizedTransformer.forward: quantize params (in-kernel), run model."""
    b, s = input_ids.shape
    v, h = params["emb"].shape
    t = b * s
    v_pad = pl.cdiv(v, LANE) * LANE

    ids2d = input_ids.reshape(t, 1).astype(jnp.int32)
    emb_t = params["emb"].T  # (H, V): removes both in-kernel embedding .T's

    # Block-diagonal causal additive bias over the flattened batch.  Depends
    # only on static shapes -> constant-folded by XLA under jit.
    pos = jnp.arange(t, dtype=jnp.int32)
    same_batch = (pos[:, None] // s) == (pos[None, :] // s)
    causal = pos[None, :] <= pos[:, None]
    bias = jnp.where(same_batch & causal, 0.0, -1e30).astype(jnp.float32)

    vmem_specs = [pl.BlockSpec(memory_space=pltpu.MemorySpace.VMEM)
                  for _ in range(9)]
    out_padded = pl.pallas_call(
        _fused_forward_kernel,
        out_shape=jax.ShapeDtypeStruct((t, v_pad), jnp.float32),
        in_specs=vmem_specs,
        out_specs=pl.BlockSpec(memory_space=pltpu.MemorySpace.VMEM),
    )(ids2d, bias, emb_t, params["wq"], params["wk"], params["wv"],
      params["wo"], params["w1"], params["w2"])

    return out_padded[:, :v].reshape(b, s, v)


# TODO(synk): TernaryQuantization.encode_to_packed_bytes /
# decode_from_packed_bytes (2-bit packing) are not exercised by forward() and
# are omitted; original_model.generate() is likewise out of scope.

if __name__ == "__main__":
    key = jax.random.PRNGKey(0)
    pkey, ikey = jax.random.split(key)
    params = init_params(pkey)
    input_ids = jax.random.randint(ikey, (BATCH, SEQ), 0, VOCAB, dtype=jnp.int32)

    logits = quantized_transformer_forward(params, input_ids)
    jax.block_until_ready(logits)

    assert logits.shape == (BATCH, SEQ, VOCAB)
    assert logits.dtype == jnp.float32
    assert bool(jnp.all(jnp.isfinite(logits)))
    print("KERNEL_OK")
</pallas_src>

<mosaic_0001>
module attributes {stable_mosaic.version = 11 : i64} {
  func.func @_fused_forward_kernel(%arg0: memref<16x1xi32, #tpu.memory_space<vmem>>, %arg1: memref<16x16xf32, #tpu.memory_space<vmem>>, %arg2: memref<32x64xf32, #tpu.memory_space<vmem>>, %arg3: memref<32x32xf32, #tpu.memory_space<vmem>>, %arg4: memref<32x32xf32, #tpu.memory_space<vmem>>, %arg5: memref<32x32xf32, #tpu.memory_space<vmem>>, %arg6: memref<32x32xf32, #tpu.memory_space<vmem>>, %arg7: memref<32x64xf32, #tpu.memory_space<vmem>>, %arg8: memref<64x32xf32, #tpu.memory_space<vmem>>, %arg9: memref<16x128xf32, #tpu.memory_space<vmem>>) attributes {dimension_semantics = [], scalar_prefetch = 0 : i64, scratch_operands = 0 : i64, tpu.core_type = #tpu.core_type<tc>} {
    %c0 = arith.constant 0 : index
    %c0_0 = arith.constant 0 : index
    %0 = vector.load %arg2[%c0, %c0_0] : memref<32x64xf32, #tpu.memory_space<vmem>>, vector<32x64xf32>
    %1 = math.absf %0 : vector<32x64xf32>
    %2 = vector.shape_cast %1 : vector<32x64xf32> to vector<1x32x64xf32>
    %cst = arith.constant dense<0.000000e+00> : vector<1xf32>
    %3 = vector.multi_reduction <add>, %2, %cst [1, 2] : vector<1x32x64xf32> to vector<1xf32>
    %4 = vector.shape_cast %3 : vector<1xf32> to vector<1x1x1xf32>
    %5 = vector.extract %4[0, 0, 0] : f32 from vector<1x1x1xf32>
    %cst_1 = arith.constant 2.048000e+03 : f32
    %6 = arith.divf %5, %cst_1 : f32
    %7 = vector.broadcast %6 : f32 to vector<32x64xf32>
    %8 = arith.divf %0, %7 : vector<32x64xf32>
    %9 = math.roundeven %8 : vector<32x64xf32>
    %cst_2 = arith.constant -1.000000e+00 : f32
    %cst_3 = arith.constant 1.000000e+00 : f32
    %10 = vector.broadcast %cst_2 : f32 to vector<32x64xf32>
    %11 = arith.maximumf %10, %9 : vector<32x64xf32>
    %12 = vector.broadcast %cst_3 : f32 to vector<32x64xf32>
    %13 = arith.minimumf %12, %11 : vector<32x64xf32>
    %c0_4 = arith.constant 0 : index
    %c0_5 = arith.constant 0 : index
    %14 = vector.load %arg3[%c0_4, %c0_5] : memref<32x32xf32, #tpu.memory_space<vmem>>, vector<32x32xf32>
    %15 = math.absf %14 : vector<32x32xf32>
    %16 = vector.shape_cast %15 : vector<32x32xf32> to vector<1x32x32xf32>
    %cst_6 = arith.constant dense<0.000000e+00> : vector<1xf32>
    %17 = vector.multi_reduction <add>, %16, %cst_6 [1, 2] : vector<1x32x32xf32> to vector<1xf32>
    %18 = vector.shape_cast %17 : vector<1xf32> to vector<1x1x1xf32>
    %19 = vector.extract %18[0, 0, 0] : f32 from vector<1x1x1xf32>
    %cst_7 = arith.constant 1.024000e+03 : f32
    %20 = arith.divf %19, %cst_7 : f32
    %21 = vector.broadcast %20 : f32 to vector<32x32xf32>
    %22 = arith.divf %14, %21 : vector<32x32xf32>
    %23 = math.roundeven %22 : vector<32x32xf32>
    %cst_8 = arith.constant -1.000000e+00 : f32
    %cst_9 = arith.constant 1.000000e+00 : f32
    %24 = vector.broadcast %cst_8 : f32 to vector<32x32xf32>
    %25 = arith.maximumf %24, %23 : vector<32x32xf32>
    %26 = vector.broadcast %cst_9 : f32 to vector<32x32xf32>
    %27 = arith.minimumf %26, %25 : vector<32x32xf32>
    %c0_10 = arith.constant 0 : index
    %c0_11 = arith.constant 0 : index
    %28 = vector.load %arg4[%c0_10, %c0_11] : memref<32x32xf32, #tpu.memory_space<vmem>>, vector<32x32xf32>
    %29 = math.absf %28 : vector<32x32xf32>
    %30 = vector.shape_cast %29 : vector<32x32xf32> to vector<1x32x32xf32>
    %cst_12 = arith.constant dense<0.000000e+00> : vector<1xf32>
    %31 = vector.multi_reduction <add>, %30, %cst_12 [1, 2] : vector<1x32x32xf32> to vector<1xf32>
    %32 = vector.shape_cast %31 : vector<1xf32> to vector<1x1x1xf32>
    %33 = vector.extract %32[0, 0, 0] : f32 from vector<1x1x1xf32>
    %cst_13 = arith.constant 1.024000e+03 : f32
    %34 = arith.divf %33, %cst_13 : f32
    %35 = vector.broadcast %34 : f32 to vector<32x32xf32>
    %36 = arith.divf %28, %35 : vector<32x32xf32>
    %37 = math.roundeven %36 : vector<32x32xf32>
    %cst_14 = arith.constant -1.000000e+00 : f32
    %cst_15 = arith.constant 1.000000e+00 : f32
    %38 = vector.broadcast %cst_14 : f32 to vector<32x32xf32>
    %39 = arith.maximumf %38, %37 : vector<32x32xf32>
    %40 = vector.broadcast %cst_15 : f32 to vector<32x32xf32>
    %41 = arith.minimumf %40, %39 : vector<32x32xf32>
    %c0_16 = arith.constant 0 : index
    %c0_17 = arith.constant 0 : index
    %42 = vector.load %arg5[%c0_16, %c0_17] : memref<32x32xf32, #tpu.memory_space<vmem>>, vector<32x32xf32>
    %43 = math.absf %42 : vector<32x32xf32>
    %44 = vector.shape_cast %43 : vector<32x32xf32> to vector<1x32x32xf32>
    %cst_18 = arith.constant dense<0.000000e+00> : vector<1xf32>
    %45 = vector.multi_reduction <add>, %44, %cst_18 [1, 2] : vector<1x32x32xf32> to vector<1xf32>
    %46 = vector.shape_cast %45 : vector<1xf32> to vector<1x1x1xf32>
    %47 = vector.extract %46[0, 0, 0] : f32 from vector<1x1x1xf32>
    %cst_19 = arith.constant 1.024000e+03 : f32
    %48 = arith.divf %47, %cst_19 : f32
    %49 = vector.broadcast %48 : f32 to vector<32x32xf32>
    %50 = arith.divf %42, %49 : vector<32x32xf32>
    %51 = math.roundeven %50 : vector<32x32xf32>
    %cst_20 = arith.constant -1.000000e+00 : f32
    %cst_21 = arith.constant 1.000000e+00 : f32
    %52 = vector.broadcast %cst_20 : f32 to vector<32x32xf32>
    %53 = arith.maximumf %52, %51 : vector<32x32xf32>
    %54 = vector.broadcast %cst_21 : f32 to vector<32x32xf32>
    %55 = arith.minimumf %54, %53 : vector<32x32xf32>
    %c0_22 = arith.constant 0 : index
    %c0_23 = arith.constant 0 : index
    %56 = vector.load %arg6[%c0_22, %c0_23] : memref<32x32xf32, #tpu.memory_space<vmem>>, vector<32x32xf32>
    %57 = math.absf %56 : vector<32x32xf32>
    %58 = vector.shape_cast %57 : vector<32x32xf32> to vector<1x32x32xf32>
    %cst_24 = arith.constant dense<0.000000e+00> : vector<1xf32>
    %59 = vector.multi_reduction <add>, %58, %cst_24 [1, 2] : vector<1x32x32xf32> to vector<1xf32>
    %60 = vector.shape_cast %59 : vector<1xf32> to vector<1x1x1xf32>
    %61 = vector.extract %60[0, 0, 0] : f32 from vector<1x1x1xf32>
    %cst_25 = arith.constant 1.024000e+03 : f32
    %62 = arith.divf %61, %cst_25 : f32
    %63 = vector.broadcast %62 : f32 to vector<32x32xf32>
    %64 = arith.divf %56, %63 : vector<32x32xf32>
    %65 = math.roundeven %64 : vector<32x32xf32>
    %cst_26 = arith.constant -1.000000e+00 : f32
    %cst_27 = arith.constant 1.000000e+00 : f32
    %66 = vector.broadcast %cst_26 : f32 to vector<32x32xf32>
    %67 = arith.maximumf %66, %65 : vector<32x32xf32>
    %68 = vector.broadcast %cst_27 : f32 to vector<32x32xf32>
    %69 = arith.minimumf %68, %67 : vector<32x32xf32>
    %c0_28 = arith.constant 0 : index
    %c0_29 = arith.constant 0 : index
    %70 = vector.load %arg7[%c0_28, %c0_29] : memref<32x64xf32, #tpu.memory_space<vmem>>, vector<32x64xf32>
    %71 = math.absf %70 : vector<32x64xf32>
    %72 = vector.shape_cast %71 : vector<32x64xf32> to vector<1x32x64xf32>
    %cst_30 = arith.constant dense<0.000000e+00> : vector<1xf32>
    %73 = vector.multi_reduction <add>, %72, %cst_30 [1, 2] : vector<1x32x64xf32> to vector<1xf32>
    %74 = vector.shape_cast %73 : vector<1xf32> to vector<1x1x1xf32>
    %75 = vector.extract %74[0, 0, 0] : f32 from vector<1x1x1xf32>
    %cst_31 = arith.constant 2.048000e+03 : f32
    %76 = arith.divf %75, %cst_31 : f32
    %77 = vector.broadcast %76 : f32 to vector<32x64xf32>
    %78 = arith.divf %70, %77 : vector<32x64xf32>
    %79 = math.roundeven %78 : vector<32x64xf32>
    %cst_32 = arith.constant -1.000000e+00 : f32
    %cst_33 = arith.constant 1.000000e+00 : f32
    %80 = vector.broadcast %cst_32 : f32 to vector<32x64xf32>
    %81 = arith.maximumf %80, %79 : vector<32x64xf32>
    %82 = vector.broadcast %cst_33 : f32 to vector<32x64xf32>
    %83 = arith.minimumf %82, %81 : vector<32x64xf32>
    %c0_34 = arith.constant 0 : index
    %c0_35 = arith.constant 0 : index
    %84 = vector.load %arg8[%c0_34, %c0_35] : memref<64x32xf32, #tpu.memory_space<vmem>>, vector<64x32xf32>
    %85 = math.absf %84 : vector<64x32xf32>
    %86 = vector.shape_cast %85 : vector<64x32xf32> to vector<1x64x32xf32>
    %cst_36 = arith.constant dense<0.000000e+00> : vector<1xf32>
    %87 = vector.multi_reduction <add>, %86, %cst_36 [1, 2] : vector<1x64x32xf32> to vector<1xf32>
    %88 = vector.shape_cast %87 : vector<1xf32> to vector<1x1x1xf32>
    %89 = vector.extract %88[0, 0, 0] : f32 from vector<1x1x1xf32>
    %cst_37 = arith.constant 2.048000e+03 : f32
    %90 = arith.divf %89, %cst_37 : f32
    %91 = vector.broadcast %90 : f32 to vector<64x32xf32>
    %92 = arith.divf %84, %91 : vector<64x32xf32>
    %93 = math.roundeven %92 : vector<64x32xf32>
    %cst_38 = arith.constant -1.000000e+00 : f32
    %cst_39 = arith.constant 1.000000e+00 : f32
    %94 = vector.broadcast %cst_38 : f32 to vector<64x32xf32>
    %95 = arith.maximumf %94, %93 : vector<64x32xf32>
    %96 = vector.broadcast %cst_39 : f32 to vector<64x32xf32>
    %97 = arith.minimumf %96, %95 : vector<64x32xf32>
    %c0_40 = arith.constant 0 : index
    %c0_41 = arith.constant 0 : index
    %98 = vector.load %arg0[%c0_40, %c0_41] : memref<16x1xi32, #tpu.memory_space<vmem>>, vector<16x1xi32>
    %99 = tpu.iota {dimensions = array<i32: 1>} : vector<16x64xi32>
    %100 = vector.broadcast %98 : vector<16x1xi32> to vector<16x64xi32>
    %101 = arith.cmpi eq, %100, %99 : vector<16x64xi32>
    %102 = arith.extui %101 : vector<16x64xi1> to vector<16x64xi32>
    %103 = arith.sitofp %102 : vector<16x64xi32> to vector<16x64xf32>
    %cst_42 = arith.constant dense<0.000000e+00> : vector<16x32xf32>
    %104 = tpu.matmul %103, %13, %cst_42 {dimension_numbers = #tpu.dot_dimension_numbers<[1], [1], [0], [0], [0, 0, 1, 0], [], []>} : vector<16x64xf32>, vector<32x64xf32>, vector<16x32xf32> -> vector<16x32xf32>
    %cst_43 = arith.constant dense<0.000000e+00> : vector<16xf32>
    %105 = vector.multi_reduction <add>, %104, %cst_43 [1] : vector<16x32xf32> to vector<16xf32>
    %106 = vector.shape_cast %105 : vector<16xf32> to vector<16x1xf32>
    %cst_44 = arith.constant 3.200000e+01 : f32
    %107 = vector.broadcast %cst_44 : f32 to vector<16x1xf32>
    %108 = arith.divf %106, %107 : vector<16x1xf32>
    %109 = vector.broadcast %108 : vector<16x1xf32> to vector<16x32xf32>
    %110 = arith.subf %104, %109 : vector<16x32xf32>
    %111 = arith.mulf %110, %110 : vector<16x32xf32>
    %cst_45 = arith.constant dense<0.000000e+00> : vector<16xf32>
    %112 = vector.multi_reduction <add>, %111, %cst_45 [1] : vector<16x32xf32> to vector<16xf32>
    %113 = vector.shape_cast %112 : vector<16xf32> to vector<16x1xf32>
    %cst_46 = arith.constant 3.200000e+01 : f32
    %114 = vector.broadcast %cst_46 : f32 to vector<16x1xf32>
    %115 = arith.divf %113, %114 : vector<16x1xf32>
    %116 = vector.broadcast %108 : vector<16x1xf32> to vector<16x32xf32>
    %117 = arith.subf %104, %116 : vector<16x32xf32>
    %cst_47 = arith.constant 9.99999974E-6 : f32
    %118 = vector.broadcast %cst_47 : f32 to vector<16x1xf32>
    %119 = arith.addf %115, %118 : vector<16x1xf32>
    %120 = math.rsqrt %119 : vector<16x1xf32>
    %121 = vector.broadcast %120 : vector<16x1xf32> to vector<16x32xf32>
    %122 = arith.mulf %117, %121 : vector<16x32xf32>
    %cst_48 = arith.constant dense<0.000000e+00> : vector<16x32xf32>
    %123 = tpu.matmul %122, %27, %cst_48 {dimension_numbers = #tpu.dot_dimension_numbers<[1], [0], [0], [1], [0, 0, 1, 1], [], []>} : vector<16x32xf32>, vector<32x32xf32>, vector<16x32xf32> -> vector<16x32xf32>
    %cst_49 = arith.constant dense<0.000000e+00> : vector<16x32xf32>
    %124 = tpu.matmul %122, %41, %cst_49 {dimension_numbers = #tpu.dot_dimension_numbers<[1], [0], [0], [1], [0, 0, 1, 1], [], []>} : vector<16x32xf32>, vector<32x32xf32>, vector<16x32xf32> -> vector<16x32xf32>
    %cst_50 = arith.constant dense<0.000000e+00> : vector<16x32xf32>
    %125 = tpu.matmul %122, %55, %cst_50 {dimension_numbers = #tpu.dot_dimension_numbers<[1], [0], [0], [1], [0, 0, 1, 1], [], []>} : vector<16x32xf32>, vector<32x32xf32>, vector<16x32xf32> -> vector<16x32xf32>
    %cst_51 = arith.constant dense<0.000000e+00> : vector<16x16xf32>
    %126 = tpu.matmul %123, %124, %cst_51 {dimension_numbers = #tpu.dot_dimension_numbers<[1], [1], [0], [0], [0, 0, 1, 0], [], []>} : vector<16x32xf32>, vector<16x32xf32>, vector<16x16xf32> -> vector<16x16xf32>
    %cst_52 = arith.constant 0.176776692 : f32
    %127 = vector.broadcast %cst_52 : f32 to vector<16x16xf32>
    %128 = arith.mulf %126, %127 : vector<16x16xf32>
    %c0_53 = arith.constant 0 : index
    %c0_54 = arith.constant 0 : index
    %129 = vector.load %arg1[%c0_53, %c0_54] : memref<16x16xf32, #tpu.memory_space<vmem>>, vector<16x16xf32>
    %130 = arith.addf %128, %129 : vector<16x16xf32>
    %cst_55 = arith.constant dense<0xFF800000> : vector<16xf32>
    %131 = vector.multi_reduction <maximumf>, %130, %cst_55 [1] : vector<16x16xf32> to vector<16xf32>
    %132 = vector.shape_cast %131 : vector<16xf32> to vector<16x1xf32>
    %133 = vector.broadcast %132 : vector<16x1xf32> to vector<16x16xf32>
    %134 = arith.subf %130, %133 : vector<16x16xf32>
    %135 = math.exp %134 : vector<16x16xf32>
    %cst_56 = arith.constant dense<0.000000e+00> : vector<16xf32>
    %136 = vector.multi_reduction <add>, %135, %cst_56 [1] : vector<16x16xf32> to vector<16xf32>
    %137 = vector.shape_cast %136 : vector<16xf32> to vector<16x1xf32>
    %138 = tpu.reciprocal %137 {approx = true} : vector<16x1xf32> -> vector<16x1xf32>
    %139 = vector.broadcast %138 : vector<16x1xf32> to vector<16x16xf32>
    %140 = arith.mulf %135, %139 : vector<16x16xf32>
    %cst_57 = arith.constant dense<0.000000e+00> : vector<16x32xf32>
    %141 = tpu.matmul %140, %125, %cst_57 {dimension_numbers = #tpu.dot_dimension_numbers<[1], [0], [0], [1], [0, 0, 1, 1], [], []>} : vector<16x16xf32>, vector<16x32xf32>, vector<16x32xf32> -> vector<16x32xf32>
    %cst_58 = arith.constant dense<0.000000e+00> : vector<16x32xf32>
    %142 = tpu.matmul %141, %69, %cst_58 {dimension_numbers = #tpu.dot_dimension_numbers<[1], [0], [0], [1], [0, 0, 1, 1], [], []>} : vector<16x32xf32>, vector<32x32xf32>, vector<16x32xf32> -> vector<16x32xf32>
    %143 = arith.addf %104, %142 : vector<16x32xf32>
    %cst_59 = arith.constant dense<0.000000e+00> : vector<16xf32>
    %144 = vector.multi_reduction <add>, %143, %cst_59 [1] : vector<16x32xf32> to vector<16xf32>
    %145 = vector.shape_cast %144 : vector<16xf32> to vector<16x1xf32>
    %cst_60 = arith.constant 3.200000e+01 : f32
    %146 = vector.broadcast %cst_60 : f32 to vector<16x1xf32>
    %147 = arith.divf %145, %146 : vector<16x1xf32>
    %148 = vector.broadcast %147 : vector<16x1xf32> to vector<16x32xf32>
    %149 = arith.subf %143, %148 : vector<16x32xf32>
    %150 = arith.mulf %149, %149 : vector<16x32xf32>
    %cst_61 = arith.constant dense<0.000000e+00> : vector<16xf32>
    %151 = vector.multi_reduction <add>, %150, %cst_61 [1] : vector<16x32xf32> to vector<16xf32>
    %152 = vector.shape_cast %151 : vector<16xf32> to vector<16x1xf32>
    %cst_62 = arith.constant 3.200000e+01 : f32
    %153 = vector.broadcast %cst_62 : f32 to vector<16x1xf32>
    %154 = arith.divf %152, %153 : vector<16x1xf32>
    %155 = vector.broadcast %147 : vector<16x1xf32> to vector<16x32xf32>
    %156 = arith.subf %143, %155 : vector<16x32xf32>
    %cst_63 = arith.constant 9.99999974E-6 : f32
    %157 = vector.broadcast %cst_63 : f32 to vector<16x1xf32>
    %158 = arith.addf %154, %157 : vector<16x1xf32>
    %159 = math.rsqrt %158 : vector<16x1xf32>
    %160 = vector.broadcast %159 : vector<16x1xf32> to vector<16x32xf32>
    %161 = arith.mulf %156, %160 : vector<16x32xf32>
    %cst_64 = arith.constant dense<0.000000e+00> : vector<16x64xf32>
    %162 = tpu.matmul %161, %83, %cst_64 {dimension_numbers = #tpu.dot_dimension_numbers<[1], [0], [0], [1], [0, 0, 1, 1], [], []>} : vector<16x32xf32>, vector<32x64xf32>, vector<16x64xf32> -> vector<16x64xf32>
    %163 = arith.mulf %162, %162 : vector<16x64xf32>
    %164 = arith.mulf %162, %163 : vector<16x64xf32>
    %cst_65 = arith.constant 4.471500e-02 : f32
    %165 = vector.broadcast %cst_65 : f32 to vector<16x64xf32>
    %166 = arith.mulf %165, %164 : vector<16x64xf32>
    %167 = arith.addf %162, %166 : vector<16x64xf32>
    %cst_66 = arith.constant 0.797884583 : f32
    %168 = vector.broadcast %cst_66 : f32 to vector<16x64xf32>
    %169 = arith.mulf %168, %167 : vector<16x64xf32>
    %170 = math.tanh %169 : vector<16x64xf32>
    %cst_67 = arith.constant 1.000000e+00 : f32
    %171 = vector.broadcast %cst_67 : f32 to vector<16x64xf32>
    %172 = arith.addf %171, %170 : vector<16x64xf32>
    %cst_68 = arith.constant 5.000000e-01 : f32
    %173 = vector.broadcast %cst_68 : f32 to vector<16x64xf32>
    %174 = arith.mulf %173, %172 : vector<16x64xf32>
    %175 = arith.mulf %162, %174 : vector<16x64xf32>
    %cst_69 = arith.constant dense<0.000000e+00> : vector<16x32xf32>
    %176 = tpu.matmul %175, %97, %cst_69 {dimension_numbers = #tpu.dot_dimension_numbers<[1], [0], [0], [1], [0, 0, 1, 1], [], []>} : vector<16x64xf32>, vector<64x32xf32>, vector<16x32xf32> -> vector<16x32xf32>
    %177 = arith.addf %143, %176 : vector<16x32xf32>
    %cst_70 = arith.constant dense<0.000000e+00> : vector<16x64xf32>
    %178 = tpu.matmul %177, %13, %cst_70 {dimension_numbers = #tpu.dot_dimension_numbers<[1], [0], [0], [1], [0, 0, 1, 1], [], []>} : vector<16x32xf32>, vector<32x64xf32>, vector<16x64xf32> -> vector<16x64xf32>
    %cst_71 = arith.constant 0.000000e+00 : f32
    %179 = vector.broadcast %cst_71 : f32 to vector<16x64xf32>
    %180 = tpu.concatenate %178, %179 in 1 : vector<16x64xf32>, vector<16x64xf32> -> vector<16x128xf32>
    %c0_72 = arith.constant 0 : index
    %c0_73 = arith.constant 0 : index
    %181 = vector.load %arg9[%c0_72, %c0_73] : memref<16x128xf32, #tpu.memory_space<vmem>>, vector<16x128xf32>
    tpu.vector_store %arg9[%c0_72, %c0_73], %180 {strides = array<i32>} : memref<16x128xf32, #tpu.memory_space<vmem>>, vector<16x128xf32>,
    return
  }
}

</mosaic_0001>

<bundles_post_ra>
// kernel: quantized_transformer_forward.1
= control target key start
LH: loop header
LB: loop body
LE: loop exit
PB: predicated region body
PF: predicated region fallthrough
CT: control target
= control target key end

     0   :  { %14 = vsyncpa [#allocation3], 0  ;;  %s2093_s0 = inlined_call_operand.vmem [shape: s32[16,1], index: 0, kind: input, shape index: {}]   ;;  %s2094_s1 = inlined_call_operand.vmem [shape: f32[16,16], index: 1, kind: input, shape index: {}]   ;;  %s2095_s2 = inlined_call_operand.vmem [shape: f32[32,64], index: 2, kind: input, shape index: {}]   ;;  %s2096_s3 = inlined_call_operand.vmem [shape: f32[32,32], index: 3, kind: input, shape index: {}]   ;;  %s2097_s4 = inlined_call_operand.vmem [shape: f32[32,32], index: 4, kind: input, shape index: {}]   ;;  %s2098_s5 = inlined_call_operand.hbm [shape: f32[32,32], index: 5, kind: input, shape index: {}]   ;;  %s2099_s6 = inlined_call_operand.hbm [shape: f32[32,32], index: 6, kind: input, shape index: {}]   ;;  %s2100_s7 = inlined_call_operand.hbm [shape: f32[32,64], index: 7, kind: input, shape index: {}]   ;;  %s2101_s8 = inlined_call_operand.vmem [shape: f32[64,32], index: 8, kind: input, shape index: {}]   ;;  %s2102_s9 = inlined_call_operand.vmem [shape: f32[16,128], index: 9, kind: output, shape index: {}]  }
   0x1   :  { %15 = vsyncpa [#allocation5], 0  ;;  %s43_s11 = sshll.u32 %s2099_s6, 4  ;;  %s1495_s12 = smov [#allocation4]   ;;  %s44_s11 = int_to_ptr.hbm [resolvable:$true] %s43_s11 }
   0x2   :  { %s45_s13 = sshll.u32 %s1495_s12, 4  ;;  %s30_s16 = sshll.u32 %s2098_s5, 4  ;;  %s46_s13 = int_to_ptr.vmem [resolvable:$true] %s45_s13  ;;  %s31_s16 = int_to_ptr.hbm [resolvable:$true] %s30_s16 }
   0x3   :  { %s1496_s17 = smov 128   ;;  %s1497_s18 = smov 8  }
   0x4   :  { %51 = dma.hbm_to_vmem [thread:$0]  %s44_s11, 512, %s46_s13, [#allocation5], %s1496_s17, %s1496_s17, %s1497_s18  }
   0x5   :  { %s1498_s19 = smov [#allocation2]   ;;  %s56_s23 = sshll.u32 %s2100_s7, 4  ;;  %s57_s23 = int_to_ptr.hbm [resolvable:$true] %s56_s23 }
   0x6   :  { %s32_s20 = sshll.u32 %s1498_s19, 4  ;;  %s1499_s6 = smov [#allocation6]   ;;  %s33_s20 = int_to_ptr.vmem [resolvable:$true] %s32_s20 }
   0x7   :  { %38 = dma.hbm_to_vmem [thread:$0]  %s31_s16, 512, %s33_s20, [#allocation3], %s1496_s17, %s1496_s17, %s1497_s18  }
   0x8   :  { %s58_s24 = sshll.u32 %s1499_s6, 4  ;;  %s59_s24 = int_to_ptr.vmem [resolvable:$true] %s58_s24 }
   0x9   :  { %64 = dma.hbm_to_vmem [thread:$0]  %s57_s23, 512, %s59_s24, [#allocation5], %s1496_s17, %s1496_s17, %s1497_s18  }
   0xa   :  { %1491 = dma.done.wait [#allocation3], 512  }
   0xb   :  { %1492 = vsyncadd [#allocation3], 4294966784 }
   0xc   :  { %1493 = dma.done.wait [#allocation5], 1024  }
   0xd   :  { %1494 = vsyncadd [#allocation5], 4294966272  ;;  %v1500_v0 = vmov 0   ;;  %v79_v1 = vld [vmem:[%s2095_s2] sm:$0xff]  ;;  %v80_v2 = vld [vmem:[%s2095_s2 + $0x8] sm:$0xff]  ;;  %vm87_vm0 = vcmask 523264   ;;  %v563_v61 = vlaneseq }
   0xe   :  { %1377 = vset.pattern.permute.xlu0 %v1500_v0  ;;  %1378 = vset.pattern.permute.xlu1 %v1500_v0  ;;  %v81_v3 = vld [vmem:[%s2095_s2 + $0x10] sm:$0xff]  ;;  %v82_v4 = vld [vmem:[%s2095_s2 + $0x18] sm:$0xff]  ;;  %v83_v5 = vand.u32 2147483647, %v79_v1  ;;  %v84_v6 = vand.u32 2147483647, %v80_v2 }
   0xf   :  { %v85_v7 = vand.u32 2147483647, %v81_v3  ;;  %v86_v8 = vand.u32 2147483647, %v82_v4  ;;  %v561_v16 = vld [vmem:[%s2093_s0] sm:$0xff]  ;;  %v562_v17 = vld [vmem:[%s2093_s0 + $0x8] sm:$0xff] }
  0x10   :  { %v88_v9 = vsel %vm87_vm0, %v83_v5, 0.0  ;;  %v89_v10 = vsel %vm87_vm0, %v84_v6, 0.0  ;;  %569 = vperm.xlu1 %1378, %v562_v17   ;;  %v1501_v18 = vmov 2048.0   ;;  %v1597_v56 = vld [vmem:[%s2097_s4] sm:$0xff]  ;;  %v1602_v57 = vld [vmem:[%s2097_s4 + $0x8] sm:$0xff]  ;;  %v1609_v62 = vld [vmem:[%s2097_s4 + $0x10] sm:$0xff] }
  0x11   :  { %v90_v11 = vadd.f32 %v89_v10, %v88_v9  ;;  %v91_v12 = vsel %vm87_vm0, %v85_v7, 0.0  ;;  %v93_v13 = vsel %vm87_vm0, %v86_v8, 0.0  ;;  %1379 = vrcp.f32 %v1501_v18  ;;  %v1614_v63 = vld [vmem:[%s2097_s4 + $0x18] sm:$0xff] }
  0x12   :  { %vm152_vm6 = vcmask 261120   ;;  %v213_v5 = vand.u32 2147483647, %v1597_v56  ;;  %v214_v6 = vand.u32 2147483647, %v1602_v57 }
  0x13   :  { %v92_v14 = vadd.f32 %v91_v12, %v90_v11  ;;  %v215_v8 = vand.u32 2147483647, %v1609_v62  ;;  %v216_v9 = vand.u32 2147483647, %v1614_v63 }
  0x14   :  { %v217_v12 = vsel %vm152_vm6, %v213_v5, 0.0 }
  0x15   :  { %v94_v15 = vadd.f32 %v93_v13, %v92_v14  ;;  %v218_v13 = vsel %vm152_vm6, %v214_v6, 0.0  ;;  %v1626_v14 = vld [vmem:[%s2096_s3] sm:$0xff] }
  0x17   :  { %95 = vadd.xlane.f32.xlu0 %v94_v15  ;;  %v1380_v19 = vpop.eup %1379  ;;  %v1631_v15 = vld [vmem:[%s2096_s3 + $0x8] sm:$0xff] }
  0x18   :  { %v105_v20 = vmul.f32 2048.0, %v1380_v19  ;;  %vm109_vm1 = vweird.f32 %v1380_v19 }
  0x1a   :  { %v106_v21 = vsub.f32 1.0, %v105_v20  ;;  %v1643_v20 = vld [vmem:[%s2096_s3 + $0x10] sm:$0xff] }
  0x1c   :  { %v107_v25 = vmul.f32 %v1380_v19, %v106_v21  ;;  %v1648_v21 = vld [vmem:[%s2096_s3 + $0x18] sm:$0xff] }
  0x1e   :  { %v108_v28 = vadd.f32 %v1380_v19, %v107_v25  ;;  %v220_v25 = vsel %vm152_vm6, %v215_v8, 0.0 }
  0x20   :  { %v110_v31 = vsel %vm109_vm1, %v1380_v19, %v108_v28  ;;  %v219_v19 = vadd.f32 %v218_v13, %v217_v12  ;;  %v148_v28 = vand.u32 2147483647, %v1626_v14 }
  0x2b   :  { %566 = vperm.xlu0 %1377, %v561_v16  }
  0x8a   :  { %v96_v22 = vpop.xlane.xlu0 %95 }
  0x8b   :  { %v97_v23 = vrot.slane %v96_v22, 4 }
  0x8d   :  { %v98_v24 = vadd.f32 %v97_v23, %v96_v22 }
  0x8f   :  { %v99_v26 = vrot.slane %v98_v24, 2 }
  0x91   :  { %v100_v27 = vadd.f32 %v99_v26, %v98_v24  ;;  %v221_v26 = vadd.f32 %v220_v25, %v219_v19 }
  0x93   :  { %v101_v29 = vrot.slane %v100_v27, 1 }
  0x95   :  { %v102_v30 = vadd.f32 %v101_v29, %v100_v27  ;;  %v222_v27 = vsel %vm152_vm6, %v216_v9, 0.0  ;;  %v149_v29 = vand.u32 2147483647, %v1631_v15 }
  0x97   :  { %1093 = vpush %v102_v30 }
  0x98   :  { %1095 = vpush %v110_v31 }
  0xc8   :  { %s1094_s0 = spop %1093 }
  0xc9   :  { %s1586_s13 = spop %1095 }
  0xca   :  { %s112_s14 = smul.f32 %s1586_s13, %s1094_s0 }
  0xcc   :  { %v113_v32 = vstv %s112_s14 }
  0xcd   :  { %1381 = vrcp.f32 %v113_v32  ;;  %v125_v36 = vand.u32 2147483648, %v113_v32  ;;  %v123_v38 = vand.u32 2147483647, %v113_v32  ;;  %vm119_vm3 = vweird.f32 %v113_v32 }
  0xcf   :  { %v126_v40 = vor.u32 1.1754944e-38, %v125_v36  ;;  %vm124_vm5 = vcmp.eq.f32.partialorder %v123_v38, 8.507059e+37  ;;  %v153_v36 = vsel %vm152_vm6, %v148_v28, 0.0 }
  0xd3   :  { %v1382_v33 = vpop.eup %1381 }
  0xd4   :  { %v115_v34 = vmul.f32 %v1382_v33, %v113_v32  ;;  %vm120_vm2 = vweird.f32 %v1382_v33  ;;  %v150_v32 = vand.u32 2147483647, %v1643_v20 }
  0xd5   :  { %vm121_vm4 = vmor %vm119_vm3, %vm120_vm2 }
  0xd6   :  { %v116_v35 = vsub.f32 1.0, %v115_v34 }
  0xd8   :  { %v117_v37 = vmul.f32 %v1382_v33, %v116_v35  ;;  %v223_v35 = vadd.f32 %v222_v27, %v221_v26 }
  0xda   :  { %v118_v39 = vadd.f32 %v1382_v33, %v117_v37  ;;  %v154_v37 = vsel %vm152_vm6, %v149_v29, 0.0  ;;  %224 = vadd.xlane.f32.xlu2 %v223_v35  ;;  %v1703_v35 = vld [vmem:[#allocation2 + $0x10] sm:$0xff] }
  0xdc   :  { %v122_v41 = vsel %vm121_vm4, %v1382_v33, %v118_v39  ;;  %v151_v33 = vand.u32 2147483647, %v1648_v21 }
  0xdd   :  { %v127_v42 = vsel %vm124_vm5, %v126_v40, %v122_v41  ;;  %v155_v40 = vadd.f32 %v154_v37, %v153_v36  ;;  %v156_v41 = vsel %vm152_vm6, %v150_v32, 0.0  ;;  %v1701_v32 = vld [vmem:[#allocation2 + $0x8] sm:$0xff] }
  0xde   :  { %v131_v43 = vmul.f32 %v127_v42, %v82_v4  ;;  %v130_v44 = vmul.f32 %v127_v42, %v81_v3  ;;  %v1589_v45 = vmul.f32 %v127_v42, %v80_v2  ;;  %v1591_v47 = vmul.f32 %v127_v42, %v79_v1 }
  0xdf   :  { %v158_v42 = vsel %vm152_vm6, %v151_v33, 0.0  ;;  %v278_v37 = vand.u32 2147483647, %v1701_v32 }
  0xe0   :  { %v1123_v46 = vcvt.f32.s32 %v131_v43  ;;  %v1115_v48 = vcvt.f32.s32 %v130_v44  ;;  %v1107_v49 = vcvt.f32.s32 %v1589_v45  ;;  %v1121_v50 = vand.u32 2147483647, %v131_v43 }
  0xe1   :  { %v1126_v52 = vand.u32 2147483648, %v131_v43  ;;  %v1113_v53 = vand.u32 2147483647, %v130_v44  ;;  %v1105_v59 = vand.u32 2147483647, %v1589_v45  ;;  %v1099_v60 = vcvt.f32.s32 %v1591_v47 }
  0xe2   :  { %v1124_v51 = vcvt.s32.f32 %v1123_v46  ;;  %v1116_v54 = vcvt.s32.f32 %v1115_v48  ;;  %v1108_v55 = vcvt.s32.f32 %v1107_v49  ;;  %v1118_v1 = vand.u32 2147483648, %v130_v44  ;;  %v567_v48 = vpop.permute.xlu0 %566 }
  0xe3   :  { %v1100_v4 = vcvt.s32.f32 %v1099_v60  ;;  %vm1122_vm7 = vcmp.lt.f32.partialorder %v1121_v50, 8388608.0  ;;  %v1110_v11 = vand.u32 2147483648, %v1589_v45  ;;  %vm1635_vm8 = vcmp.lt.f32.partialorder %v1113_v53, 8388608.0  ;;  %v570_v53 = vpop.permute.xlu1 %569 }
  0xe4   :  { %v1125_v58 = vand.u32 2147483647, %v1124_v51  ;;  %v1117_v0 = vand.u32 2147483647, %v1116_v54  ;;  %v1109_v2 = vand.u32 2147483647, %v1108_v55 }
  0xe5   :  { %v1097_v18 = vand.u32 2147483647, %v1591_v47  ;;  %v1101_v24 = vand.u32 2147483647, %v1100_v4  ;;  %vm1658_vm9 = vcmp.lt.f32.partialorder %v1105_v59, 8388608.0  ;;  %v1102_v31 = vand.u32 2147483648, %v1591_v47 }
  0xe6   :  { %v1127_v3 = vor.u32 %v1126_v52, %v1125_v58  ;;  %v1119_v7 = vor.u32 %v1118_v1, %v1117_v0  ;;  %v1111_v23 = vor.u32 %v1110_v11, %v1109_v2  ;;  %v1502_v51 = vmov 0.0  }
  0xe7   :  { %v1103_v39 = vor.u32 %v1102_v31, %v1101_v24  ;;  %vm1098_vm10 = vcmp.lt.f32.partialorder %v1097_v18, 8388608.0  ;;  %v1503_v55 = vmov 1024.0   ;;  %v1504_v24 = vmov 32.0   ;;  %v1699_v31 = vld [vmem:[#allocation2] sm:$0xff] }
  0xe8   :  { %v1128_v10 = vsel %vm1122_vm7, %v1127_v3, %v131_v43  ;;  %v1120_v22 = vsel %vm1635_vm8, %v1119_v7, %v130_v44  ;;  %v1112_v38 = vsel %vm1658_vm9, %v1111_v23, %v1589_v45  ;;  %v564_v43 = vand.u32 127, %v563_v61 }
  0xe9   :  { %v1633_v16 = vclamps-f32 %v1128_v10, 1.0  ;;  %v1665_v34 = vclamps-f32 %v1120_v22, 1.0  ;;  %v157_v44 = vadd.f32 %v156_v41, %v155_v40  ;;  %v1676_v46 = vclamps-f32 %v1112_v38, 1.0 }
  0xea   :  { %v1104_v49 = vsel %vm1098_vm10, %v1103_v39, %v1591_v47  ;;  %vm571_vm11 = vcmp.eq.s32.totalorder %v567_v48, %v564_v43  ;;  %vm572_vm12 = vcmp.eq.s32.totalorder %v570_v53, %v564_v43  ;;  %1383 = vrcp.f32 %v1503_v55 }
  0xeb   :  { %1063 = vmatpush.xpose.msk.msra.mxu0 %vm87_vm0, %v1633_v16  ;;  %v159_v50 = vadd.f32 %v158_v42, %v157_v44  ;;  %v1681_v45 = vclamps-f32 %v1104_v49, 1.0  ;;  %v1061_v52 = vsel %vm571_vm11, 1.0, %v1502_v51  ;;  %v1062_v54 = vsel %vm572_vm12, 1.0, %v1502_v51 }
  0xec   :  { %1385 = vrcp.f32 %v1504_v24  ;;  %v277_v36 = vand.u32 2147483647, %v1699_v31  ;;  %v279_v51 = vand.u32 2147483647, %v1703_v35 }
  0xed   :  { %160 = vadd.xlane.f32.xlu1 %v159_v50  ;;  %v1707_v50 = vld [vmem:[#allocation2 + $0x18] sm:$0xff] }
  0xee   :  { %v281_v53 = vsel %vm152_vm6, %v277_v36, 0.0 }
  0xef   :  { %1064 = vmatpush.xpose.msk.msra.mxu0 %vm87_vm0, %v1665_v34 }
  0xf0   :  { %v1384_v0 = vpop.eup %1383 }
  0xf1   :  { %v170_v2 = vmul.f32 1024.0, %v1384_v0  ;;  %vm174_vm13 = vweird.f32 %v1384_v0 }
  0xf2   :  { %v1386_v25 = vpop.eup %1385 }
  0xf3   :  { %1065 = vmatpush.xpose.msk.msra.mxu0 %vm87_vm0, %v1676_v46  ;;  %v171_v5 = vsub.f32 1.0, %v170_v2  ;;  %v625_v26 = vmul.f32 32.0, %v1386_v25  ;;  %vm629_vm14 = vweird.f32 %v1386_v25 }
  0xf5   :  { %v172_v7 = vmul.f32 %v1384_v0, %v171_v5  ;;  %v626_v27 = vsub.f32 1.0, %v625_v26 }
  0xf7   :  { %1066 = vmatpush.xpose.msk.msra.mxu0 %vm87_vm0, %v1681_v45  ;;  %v173_v10 = vadd.f32 %v1384_v0, %v172_v7  ;;  %v627_v30 = vmul.f32 %v1386_v25, %v626_v27 }
  0xf9   :  { %v175_v13 = vsel %vm174_vm13, %v1384_v0, %v173_v10  ;;  %v628_v39 = vadd.f32 %v1386_v25, %v627_v30 }
  0xfa   :  { %1067 = vmatmul.msk.f32.vlgmr.msra.gmra.mxu0 %vm87_vm0, %v1061_v52 }
  0xfb   :  { %v1713_v55 = vsel %vm629_vm14, %v1386_v25, %v628_v39 }
 0x102   :  { %1068 = vmatmul.msk.f32.gmra.mxu0 %vm87_vm0, %v1062_v54  ;;  %v282_v54 = vsel %vm152_vm6, %v278_v37, 0.0 }
 0x103   :  { %v283_v2 = vadd.f32 %v282_v54, %v281_v53 }
 0x14d   :  { %v225_v47 = vpop.xlane.xlu2 %224 }
 0x14e   :  { %v226_v58 = vrot.slane %v225_v47, 4 }
 0x150   :  { %v227_v59 = vadd.f32 %v226_v58, %v225_v47 }
 0x152   :  { %v228_v60 = vrot.slane %v227_v59, 2 }
 0x154   :  { %v229_v4 = vadd.f32 %v228_v60, %v227_v59 }
 0x156   :  { %v230_v9 = vrot.slane %v229_v4, 1 }
 0x158   :  { %v231_v17 = vadd.f32 %v230_v9, %v229_v4  ;;  %v284_v4 = vsel %vm152_vm6, %v279_v51, 0.0 }
 0x160   :  { %v161_v61 = vpop.xlane.xlu1 %160 }
 0x161   :  { %v162_v1 = vrot.slane %v161_v61, 4 }
 0x163   :  { %v163_v3 = vadd.f32 %v162_v1, %v161_v61  ;;  %v280_v61 = vand.u32 2147483647, %v1707_v50 }
 0x165   :  { %v164_v6 = vrot.slane %v163_v3, 2  ;;  %v1727_v9 = vsel %vm152_vm6, %v280_v61, 0.0 }
 0x167   :  { %v165_v8 = vadd.f32 %v164_v6, %v163_v3 }
 0x169   :  { %v166_v11 = vrot.slane %v165_v8, 1 }
 0x16b   :  { %v167_v12 = vadd.f32 %v166_v11, %v165_v8 }
 0x16d   :  { %1129 = vpush %v167_v12  ;;  %v1731_v12 = vadd.f32 %v284_v4, %v283_v2 }
 0x16e   :  { %1131 = vpush %v175_v13 }
 0x16f   :  { %1165 = vpush %v231_v17 }
 0x177   :  { %v1687_v18 = vpop.f32.mrf.mxu0 }
 0x178   :  { %v618_v19 = vsel %vm152_vm6, %v1687_v18, 0.0 }
 0x179   :  { %619 = vadd.xlane.f32.xlu2 %v618_v19 }
 0x17f   :  { %v1691_v22 = vpop.f32.mrf.mxu0 }
 0x180   :  { %v621_v23 = vsel %vm152_vm6, %v1691_v22, 0.0 }
 0x181   :  { %622 = vadd.xlane.f32.xlu2 %v621_v23 }
 0x19e   :  { %s1130_s3 = spop %1129 }
 0x19f   :  { %s1695_s27 = spop %1131 }
 0x1a0   :  { %s1166_s28 = spop %1165  ;;  %s177_s29 = smul.f32 %s1695_s27, %s1130_s3 }
 0x1a1   :  { %s241_s30 = smul.f32 %s1166_s28, %s1695_s27 }
 0x1a2   :  { %v178_v28 = vstv %s177_s29 }
 0x1a3   :  { %v242_v29 = vstv %s241_s30  ;;  %1387 = vrcp.f32 %v178_v28  ;;  %vm184_vm15 = vweird.f32 %v178_v28  ;;  %v188_v41 = vand.u32 2147483647, %v178_v28 }
 0x1a4   :  { %1389 = vrcp.f32 %v242_v29  ;;  %v190_v42 = vand.u32 2147483648, %v178_v28  ;;  %vm248_vm1 = vweird.f32 %v242_v29  ;;  %v252_v44 = vand.u32 2147483647, %v242_v29 }
 0x1a5   :  { %v254_v49 = vand.u32 2147483648, %v242_v29  ;;  %vm189_vm5 = vcmp.eq.f32.partialorder %v188_v41, 8.507059e+37 }
 0x1a6   :  { %v191_v59 = vor.u32 1.1754944e-38, %v190_v42  ;;  %vm253_vm8 = vcmp.eq.f32.partialorder %v252_v44, 8.507059e+37 }
 0x1a7   :  { %v255_v1 = vor.u32 1.1754944e-38, %v254_v49 }
 0x1a9   :  { %v1388_v33 = vpop.eup %1387 }
 0x1aa   :  { %v1390_v38 = vpop.eup %1389  ;;  %v180_v40 = vmul.f32 %v1388_v33, %v178_v28  ;;  %vm185_vm2 = vweird.f32 %v1388_v33 }
 0x1ab   :  { %v244_v43 = vmul.f32 %v1390_v38, %v242_v29  ;;  %vm249_vm3 = vweird.f32 %v1390_v38  ;;  %vm1716_vm4 = vmor %vm184_vm15, %vm185_vm2 }
 0x1ac   :  { %v181_v48 = vsub.f32 1.0, %v180_v40  ;;  %vm250_vm7 = vmor %vm248_vm1, %vm249_vm3 }
 0x1ad   :  { %v245_v52 = vsub.f32 1.0, %v244_v43 }
 0x1ae   :  { %v182_v47 = vmul.f32 %v1388_v33, %v181_v48 }
 0x1af   :  { %v246_v60 = vmul.f32 %v1390_v38, %v245_v52 }
 0x1b0   :  { %v183_v0 = vadd.f32 %v1388_v33, %v182_v47 }
 0x1b1   :  { %v247_v3 = vadd.f32 %v1390_v38, %v246_v60 }
 0x1b2   :  { %v187_v6 = vsel %vm1716_vm4, %v1388_v33, %v183_v0 }
 0x1b3   :  { %v251_v8 = vsel %vm250_vm7, %v1390_v38, %v247_v3  ;;  %v1729_v10 = vsel %vm189_vm5, %v191_v59, %v187_v6 }
 0x1b4   :  { %v256_v11 = vsel %vm253_vm8, %v255_v1, %v251_v8  ;;  %v1735_v13 = vmul.f32 %v1729_v10, %v1648_v21  ;;  %v1739_v17 = vmul.f32 %v1729_v10, %v1643_v20  ;;  %v1754_v20 = vmul.f32 %v1729_v10, %v1631_v15 }
 0x1b5   :  { %v260_v23 = vmul.f32 %v256_v11, %v1614_v63  ;;  %v259_v24 = vmul.f32 %v256_v11, %v1609_v62  ;;  %v258_v25 = vmul.f32 %v256_v11, %v1602_v57  ;;  %v1748_v26 = vmul.f32 %v256_v11, %v1597_v56 }
 0x1b6   :  { %v1157_v27 = vand.u32 2147483647, %v1735_v13  ;;  %v1159_v21 = vcvt.f32.s32 %v1735_v13  ;;  %v1162_v62 = vand.u32 2147483648, %v1735_v13  ;;  %v1149_v3 = vand.u32 2147483647, %v1739_v17 }
 0x1b7   :  { %v1191_v29 = vand.u32 2147483647, %v260_v23  ;;  %v1193_v63 = vcvt.f32.s32 %v260_v23  ;;  %v1196_v30 = vand.u32 2147483648, %v260_v23  ;;  %v1183_v57 = vand.u32 2147483647, %v259_v24 }
 0x1b8   :  { %v1185_v33 = vcvt.f32.s32 %v259_v24  ;;  %v1175_v56 = vand.u32 2147483647, %v258_v25  ;;  %v1188_v38 = vand.u32 2147483648, %v259_v24  ;;  %v1177_v39 = vcvt.f32.s32 %v258_v25 }
 0x1b9   :  { %v1194_v37 = vcvt.s32.f32 %v1193_v63  ;;  %vm1760_vm9 = vcmp.lt.f32.partialorder %v1191_v29, 8388608.0  ;;  %vm1764_vm10 = vcmp.lt.f32.partialorder %v1183_v57, 8388608.0  ;;  %v1180_v51 = vand.u32 2147483648, %v258_v25 }
 0x1ba   :  { %v1186_v42 = vcvt.s32.f32 %v1185_v33  ;;  %vm1768_vm11 = vcmp.lt.f32.partialorder %v1175_v56, 8388608.0  ;;  %v1178_v49 = vcvt.s32.f32 %v1177_v39  ;;  %v1167_v53 = vand.u32 2147483647, %v1748_v26 }
 0x1bb   :  { %v1195_v48 = vand.u32 2147483647, %v1194_v37  ;;  %v1169_v54 = vcvt.f32.s32 %v1748_v26  ;;  %v1172_v47 = vand.u32 2147483648, %v1748_v26  ;;  %vm1779_vm12 = vcmp.lt.f32.partialorder %v1157_v27, 8388608.0 }
 0x1bc   :  { %v1187_v52 = vand.u32 2147483647, %v1186_v42  ;;  %v1179_v60 = vand.u32 2147483647, %v1178_v49  ;;  %v1160_v2 = vcvt.s32.f32 %v1159_v21  ;;  %vm1794_vm13 = vcmp.lt.f32.partialorder %v1167_v53, 8388608.0 }
 0x1bd   :  { %v1197_v59 = vor.u32 %v1196_v30, %v1195_v48  ;;  %v1170_v1 = vcvt.s32.f32 %v1169_v54  ;;  %vm1798_vm14 = vcmp.lt.f32.partialorder %v1149_v3, 8388608.0  ;;  %v1141_v37 = vand.u32 2147483647, %v1754_v20 }
 0x1be   :  { %v1189_v0 = vor.u32 %v1188_v38, %v1187_v52  ;;  %v1181_v6 = vor.u32 %v1180_v51, %v1179_v60  ;;  %v1146_v43 = vand.u32 2147483648, %v1754_v20 }
 0x1bf   :  { %v1171_v27 = vand.u32 2147483647, %v1170_v1  ;;  %vm1142_vm15 = vcmp.lt.f32.partialorder %v1141_v37, 8388608.0 }
 0x1c0   :  { %v1190_v11 = vsel %vm1764_vm10, %v1189_v0, %v259_v24  ;;  %v1182_v63 = vsel %vm1768_vm11, %v1181_v6, %v258_v25  ;;  %v1143_v25 = vcvt.f32.s32 %v1754_v20 }
 0x1c1   :  { %v1039_v21 = vclamps-f32 %v1190_v11, 1.0  ;;  %v1173_v57 = vor.u32 %v1172_v47, %v1171_v27 }
 0x1c2   :  { %v1144_v42 = vcvt.s32.f32 %v1143_v25 }
 0x1c3   :  { %v1174_v38 = vsel %vm1794_vm13, %v1173_v57, %v1748_v26 }
 0x1c4   :  { %v1037_v15 = vclamps-f32 %v1174_v38, 1.0  ;;  %v1145_v26 = vand.u32 2147483647, %v1144_v42 }
 0x1c6   :  { %v1147_v53 = vor.u32 %v1146_v43, %v1145_v26 }
 0x1ec   :  { %v620_v5 = vpop.xlane.xlu2 %619 }
 0x1ed   :  { %v631_v7 = vmul.f32 %v1713_v55, %v620_v5  ;;  %v1198_v5 = vsel %vm1760_vm9, %v1197_v59, %v260_v23  ;;  %v1038_v23 = vclamps-f32 %v1182_v63, 1.0 }
 0x1ee   :  { %v1040_v8 = vclamps-f32 %v1198_v5, 1.0 }
 0x1ef   :  { %v1742_v19 = vsub.f32 %v1687_v18, %v631_v7  ;;  %v1151_v7 = vcvt.f32.s32 %v1739_v17 }
 0x1f0   :  { %710 = vmatpush.msra.mxu2 %v1040_v8 }
 0x1f1   :  { %v635_v28 = vmul.f32 %v1742_v19, %v1742_v19  ;;  %v1152_v56 = vcvt.s32.f32 %v1151_v7 }
 0x1f2   :  { %711 = vmatpush.msra.mxu2 %v1039_v21 }
 0x1f3   :  { %v637_v36 = vsel %vm152_vm6, %v635_v28, 0.0  ;;  %v1161_v28 = vand.u32 2147483647, %v1160_v2  ;;  %v1153_v39 = vand.u32 2147483647, %v1152_v56 }
 0x1f4   :  { %638 = vadd.xlane.f32.xlu2 %v637_v36  ;;  %v623_v40 = vpop.xlane.xlu2 %622  ;;  %v1154_v36 = vand.u32 2147483648, %v1739_v17  ;;  %712 = vmatpush.msra.mxu2 %v1038_v23 }
 0x1f5   :  { %v632_v44 = vmul.f32 %v1713_v55, %v623_v40  ;;  %v1163_v33 = vor.u32 %v1162_v62, %v1161_v28  ;;  %v193_v40 = vmul.f32 %v1729_v10, %v1626_v14 }
 0x1f6   :  { %v1155_v48 = vor.u32 %v1154_v36, %v1153_v39  ;;  %713 = vmatpush.msra.mxu2 %v1037_v15 }
 0x1f7   :  { %v1777_v58 = vsub.f32 %v1691_v22, %v632_v44  ;;  %v1164_v62 = vsel %vm1779_vm12, %v1163_v33, %v1735_v13  ;;  %v287_v44 = vadd.f32 %v1727_v9, %v1731_v12  ;;  %v1135_v49 = vcvt.f32.s32 %v193_v40 }
 0x1f8   :  { %v1036_v41 = vclamps-f32 %v1164_v62, 1.0  ;;  %v1133_v51 = vand.u32 2147483647, %v193_v40  ;;  %v1156_v14 = vsel %vm1798_vm14, %v1155_v48, %v1739_v17  ;;  %v1138_v13 = vand.u32 2147483648, %v193_v40 }
 0x1f9   :  { %v636_v4 = vmul.f32 %v1777_v58, %v1777_v58  ;;  %v1136_v10 = vcvt.s32.f32 %v1135_v49  ;;  %v1035_v52 = vclamps-f32 %v1156_v14, 1.0  ;;  %v1148_v9 = vsel %vm1142_vm15, %v1147_v53, %v1754_v20 }
 0x1fa   :  { %687 = vmatpush.msra.mxu1 %v1036_v41  ;;  %1089 = vmatpush.msra.mxu3 %v1036_v41  ;;  %vm1134_vm1 = vcmp.lt.f32.partialorder %v1133_v51, 8388608.0  ;;  %v1034_v12 = vclamps-f32 %v1148_v9, 1.0 }
 0x1fb   :  { %v640_v29 = vsel %vm152_vm6, %v636_v4, 0.0  ;;  %v1137_v54 = vand.u32 2147483647, %v1136_v10 }
 0x1fc   :  { %641 = vadd.xlane.f32.xlu2 %v640_v29  ;;  %688 = vmatpush.msra.mxu1 %v1035_v52 }
 0x1fd   :  { %1090 = vmatpush.msra.mxu3 %v1035_v52  ;;  %v1139_v47 = vor.u32 %v1138_v13, %v1137_v54 }
 0x1fe   :  { %689 = vmatpush.msra.mxu1 %v1034_v12 }
 0x1ff   :  { %1091 = vmatpush.msra.mxu3 %v1034_v12  ;;  %v1140_v59 = vsel %vm1134_vm1, %v1139_v47, %v193_v40 }
 0x200   :  { %v1033_v60 = vclamps-f32 %v1140_v59, 1.0 }
 0x202   :  { %690 = vmatpush.msra.mxu1 %v1033_v60  ;;  %1092 = vmatpush.msra.mxu3 %v1033_v60 }
 0x204   :  { %288 = vadd.xlane.f32.xlu2 %v287_v44 }
 0x267   :  { %v639_v17 = vpop.xlane.xlu2 %638 }
 0x268   :  { %v643_v61 = vmul.f32 %v639_v17, %v1713_v55 }
 0x26a   :  { %v645_v0 = vadd.f32 1e-05, %v643_v61 }
 0x26c   :  { %1391 = vrsqrt.f32 %v645_v0  ;;  %vm653_vm3 = vweird.f32 %v645_v0 }
 0x26f   :  { %v642_v1 = vpop.xlane.xlu2 %641 }
 0x270   :  { %v644_v2 = vmul.f32 %v642_v1, %v1713_v55 }
 0x272   :  { %v1392_v3 = vpop.eup %1391  ;;  %v646_v4 = vadd.f32 1e-05, %v644_v2 }
 0x273   :  { %v648_v20 = vmul.f32 %v1392_v3, %v645_v0  ;;  %vm654_vm2 = vweird.f32 %v1392_v3 }
 0x274   :  { %1393 = vrsqrt.f32 %v646_v4  ;;  %vm655_vm4 = vmor %vm653_vm3, %vm654_vm2  ;;  %vm663_vm7 = vweird.f32 %v646_v4  ;;  %vm785_vm2 = vcmask 130048  }
 0x275   :  { %v649_v5 = vmul.f32 %v1392_v3, %v648_v20 }
 0x277   :  { %v650_v6 = vmul.f32 0.5, %v649_v5  ;;  %v289_v7 = vpop.xlane.xlu2 %288 }
 0x278   :  { %v290_v8 = vrot.slane %v289_v7, 4 }
 0x279   :  { %v651_v11 = vsub.f32 1.5, %v650_v6 }
 0x27a   :  { %v1394_v27 = vpop.eup %1393  ;;  %v291_v28 = vadd.f32 %v290_v8, %v289_v7 }
 0x27b   :  { %v658_v29 = vmul.f32 %v1394_v27, %v646_v4  ;;  %v652_v21 = vmul.f32 %v1392_v3, %v651_v11  ;;  %vm664_vm5 = vweird.f32 %v1394_v27 }
 0x27c   :  { %v292_v63 = vrot.slane %v291_v28, 2  ;;  %vm665_vm8 = vmor %vm663_vm7, %vm664_vm5 }
 0x27d   :  { %v659_v30 = vmul.f32 %v1394_v27, %v658_v29  ;;  %v656_v23 = vsel %vm655_vm4, %v1392_v3, %v652_v21 }
 0x27e   :  { %v1823_v57 = vmul.f32 %v656_v23, %v1742_v19  ;;  %v293_v33 = vadd.f32 %v292_v63, %v291_v28 }
 0x27f   :  { %v660_v56 = vmul.f32 0.5, %v659_v30 }
 0x280   :  { %1069 = vmatmul.msk.f32.vlgmr.msra.gmra.mxu1 %vm152_vm6, %v1823_v57  ;;  %1071 = vmatmul.msk.f32.vlgmr.msra.gmra.mxu2 %vm152_vm6, %v1823_v57  ;;  %v294_v24 = vrot.slane %v293_v33, 1 }
 0x281   :  { %v661_v36 = vsub.f32 1.5, %v660_v56 }
 0x282   :  { %v295_v37 = vadd.f32 %v294_v24, %v293_v33 }
 0x283   :  { %v662_v25 = vmul.f32 %v1394_v27, %v661_v36 }
 0x284   :  { %1199 = vpush %v295_v37 }
 0x285   :  { %v666_v38 = vsel %vm665_vm8, %v1394_v27, %v662_v25  ;;  %v781_v25 = vld [vmem:[%s2094_s1] sm:$0xff] }
 0x286   :  { %v1830_v19 = vmul.f32 %v666_v38, %v1777_v58 }
 0x288   :  { %1070 = vmatmul.msk.f32.vlgmr.msra.gmra.mxu3 %vm152_vm6, %v1830_v19  ;;  %1072 = vmatmul.msk.f32.gmra.mxu2 %vm152_vm6, %v1830_v19 }
 0x2b5   :  { %s1200_s10 = spop %1199 }
 0x2b6   :  { %s305_s11 = smul.f32 %s1200_s10, %s1695_s27 }
 0x2b8   :  { %v306_v62 = vstv %s305_s11 }
 0x2b9   :  { %1395 = vrcp.f32 %v306_v62  ;;  %v318_v41 = vand.u32 2147483648, %v306_v62  ;;  %v316_v43 = vand.u32 2147483647, %v306_v62  ;;  %vm312_vm10 = vweird.f32 %v306_v62 }
 0x2bb   :  { %v319_v58 = vor.u32 1.1754944e-38, %v318_v41  ;;  %vm317_vm12 = vcmp.eq.f32.partialorder %v316_v43, 8.507059e+37 }
 0x2bf   :  { %v1396_v39 = vpop.eup %1395 }
 0x2c0   :  { %v308_v40 = vmul.f32 %v1396_v39, %v306_v62  ;;  %vm313_vm9 = vweird.f32 %v1396_v39 }
 0x2c1   :  { %vm314_vm11 = vmor %vm312_vm10, %vm313_vm9 }
 0x2c2   :  { %v309_v15 = vsub.f32 1.0, %v308_v40  ;;  %v1861_v40 = vld [vmem:[#allocation4] sm:$0xff] }
 0x2c3   :  { %v341_v43 = vand.u32 2147483647, %v1861_v40 }
 0x2c4   :  { %v310_v42 = vmul.f32 %v1396_v39, %v309_v15  ;;  %v1863_v15 = vld [vmem:[#allocation4 + $0x8] sm:$0xff] }
 0x2c6   :  { %v311_v44 = vadd.f32 %v1396_v39, %v310_v42 }
 0x2c8   :  { %v315_v48 = vsel %vm314_vm11, %v1396_v39, %v311_v44  ;;  %v342_v44 = vand.u32 2147483647, %v1863_v15 }
 0x2c9   :  { %v320_v49 = vsel %vm317_vm12, %v319_v58, %v315_v48  ;;  %v1867_v48 = vld [vmem:[#allocation4 + $0x10] sm:$0xff] }
 0x2ca   :  { %v324_v26 = vmul.f32 %v320_v49, %v1707_v50  ;;  %v323_v51 = vmul.f32 %v320_v49, %v1703_v35  ;;  %v322_v14 = vmul.f32 %v320_v49, %v1701_v32  ;;  %v321_v13 = vmul.f32 %v320_v49, %v1699_v31  ;;  %v1869_v49 = vld [vmem:[#allocation4 + $0x18] sm:$0xff] }
 0x2cc   :  { %v1227_v10 = vcvt.f32.s32 %v324_v26  ;;  %v1219_v52 = vcvt.f32.s32 %v323_v51  ;;  %v1211_v53 = vcvt.f32.s32 %v322_v14  ;;  %v1225_v9 = vand.u32 2147483647, %v324_v26 }
 0x2cd   :  { %v1230_v12 = vand.u32 2147483648, %v324_v26  ;;  %v1217_v17 = vand.u32 2147483647, %v323_v51  ;;  %v1209_v61 = vand.u32 2147483647, %v322_v14  ;;  %v1203_v0 = vcvt.f32.s32 %v321_v13 }
 0x2ce   :  { %v1228_v54 = vcvt.s32.f32 %v1227_v10  ;;  %v1220_v47 = vcvt.s32.f32 %v1219_v52  ;;  %v1212_v59 = vcvt.s32.f32 %v1211_v53  ;;  %v1222_v50 = vand.u32 2147483648, %v323_v51  ;;  %v1874_v10 = vld [vmem:[#allocation6] sm:$0xff] }
 0x2cf   :  { %v1214_v35 = vand.u32 2147483648, %v322_v14  ;;  %v1204_v32 = vcvt.s32.f32 %v1203_v0  ;;  %vm1226_vm13 = vcmp.lt.f32.partialorder %v1225_v9, 8388608.0  ;;  %v1201_v20 = vand.u32 2147483647, %v321_v13 }
 0x2d0   :  { %v1229_v60 = vand.u32 2147483647, %v1228_v54  ;;  %v1221_v1 = vand.u32 2147483647, %v1220_v47  ;;  %v1213_v2 = vand.u32 2147483647, %v1212_v59 }
 0x2d1   :  { %vm1218_vm14 = vcmp.lt.f32.partialorder %v1217_v17, 8388608.0  ;;  %v1205_v6 = vand.u32 2147483647, %v1204_v32  ;;  %v1206_v7 = vand.u32 2147483648, %v321_v13  ;;  %vm1210_vm15 = vcmp.lt.f32.partialorder %v1209_v61, 8388608.0  ;;  %v1882_v61 = vld [vmem:[#allocation6 + $0x10] sm:$0xff] }
 0x2d2   :  { %v1231_v3 = vor.u32 %v1230_v12, %v1229_v60  ;;  %v1223_v4 = vor.u32 %v1222_v50, %v1221_v1  ;;  %v1215_v31 = vor.u32 %v1214_v35, %v1213_v2  ;;  %vm1202_vm1 = vcmp.lt.f32.partialorder %v1201_v20, 8388608.0  ;;  %v1889_v32 = vld [vmem:[#allocation6 + $0x18] sm:$0xff] }
 0x2d3   :  { %v1207_v28 = vor.u32 %v1206_v7, %v1205_v6  ;;  %v344_v54 = vand.u32 2147483647, %v1869_v49  ;;  %v405_v47 = vand.u32 2147483647, %v1874_v10  ;;  %v407_v2 = vand.u32 2147483647, %v1882_v61 }
 0x2d4   :  { %v1232_v5 = vsel %vm1226_vm13, %v1231_v3, %v324_v26  ;;  %v1224_v11 = vsel %vm1218_vm14, %v1223_v4, %v323_v51  ;;  %v1216_v27 = vsel %vm1210_vm15, %v1215_v31, %v322_v14  ;;  %v343_v26 = vand.u32 2147483647, %v1867_v48 }
 0x2d5   :  { %v1044_v8 = vclamps-f32 %v1232_v5, 1.0  ;;  %v1043_v29 = vclamps-f32 %v1224_v11, 1.0  ;;  %v1208_v21 = vsel %vm1202_vm1, %v1207_v28, %v321_v13  ;;  %v1042_v63 = vclamps-f32 %v1216_v27, 1.0  ;;  %v1876_v13 = vld [vmem:[#allocation6 + $0x8] sm:$0xff] }
 0x2d6   :  { %v1041_v30 = vclamps-f32 %v1208_v21, 1.0  ;;  %v345_v51 = vsel %vm152_vm6, %v341_v43, 0.0  ;;  %v346_v14 = vsel %vm152_vm6, %v342_v44, 0.0  ;;  %v348_v12 = vsel %vm152_vm6, %v343_v26, 0.0 }
 0x2d7   :  { %733 = vmatpush.msrb.mxu3 %v1044_v8  ;;  %v347_v9 = vadd.f32 %v346_v14, %v345_v51  ;;  %v406_v59 = vand.u32 2147483647, %v1876_v13  ;;  %v350_v50 = vsel %vm152_vm6, %v344_v54, 0.0  ;;  %v409_v35 = vsel %vm87_vm0, %v405_v47, 0.0 }
 0x2d8   :  { %v408_v20 = vand.u32 2147483647, %v1889_v32  ;;  %v412_v5 = vsel %vm87_vm0, %v407_v2, 0.0 }
 0x2d9   :  { %734 = vmatpush.msrb.mxu3 %v1043_v29  ;;  %v349_v1 = vadd.f32 %v348_v12, %v347_v9  ;;  %v410_v3 = vsel %vm87_vm0, %v406_v59, 0.0 }
 0x2da   :  { %v411_v31 = vadd.f32 %v410_v3, %v409_v35  ;;  %v414_v11 = vsel %vm87_vm0, %v408_v20, 0.0 }
 0x2db   :  { %735 = vmatpush.msrb.mxu3 %v1042_v63  ;;  %v351_v4 = vadd.f32 %v350_v50, %v349_v1 }
 0x2dc   :  { %v413_v8 = vadd.f32 %v412_v5, %v411_v31 }
 0x2dd   :  { %736 = vmatpush.msrb.mxu3 %v1041_v30 }
 0x2de   :  { %1073 = vmatmul.msk.f32.vlgmr.msrb.gmra.mxu3 %vm152_vm6, %v1823_v57  ;;  %v415_v27 = vadd.f32 %v414_v11, %v413_v8 }
 0x2e6   :  { %1074 = vmatmul.msk.f32.gmra.mxu3 %vm152_vm6, %v1830_v19 }
 0x2fd   :  { %v692_v56 = vpop.f32.mrf.mxu1 }
 0x303   :  { %v715_v23 = vpop.f32.mrf.mxu2 }
 0x30b   :  { %v718_v33 = vpop.f32.mrf.mxu2  ;;  %v695_v24 = vpop.f32.mrf.mxu3 }
 0x30c   :  { %1075 = vmatpush.xpose.msk.msrb.mxu1 %vm152_vm6, %v718_v33 }
 0x310   :  { %1076 = vmatpush.xpose.msk.msrb.mxu1 %vm152_vm6, %v715_v23 }
 0x313   :  { %1077 = vmatmul.msk.f32.vlgmr.msrb.gmra.mxu1 %vm152_vm6, %v692_v56 }
 0x31b   :  { %1078 = vmatmul.msk.f32.gmra.mxu1 %vm152_vm6, %v695_v24 }
 0x361   :  { %v738_v36 = vpop.f32.mrf.mxu3 }
 0x369   :  { %v741_v37 = vpop.f32.mrf.mxu3 }
 0x36a   :  { %828 = vmatpush.msrb.mxu2 %v741_v37 }
 0x36c   :  { %829 = vmatpush.msrb.mxu2 %v738_v36 }
 0x36e   :  { %1008 = vmatpush.msra.mxu2 %v1633_v16  ;;  %v782_v16 = vld [vmem:[%s2094_s1 + $0x8] sm:$0xff] }
 0x370   :  { %1009 = vmatpush.msra.mxu2 %v1665_v34 }
 0x372   :  { %1010 = vmatpush.msra.mxu2 %v1676_v46 }
 0x374   :  { %1011 = vmatpush.msra.mxu2 %v1681_v45 }
 0x390   :  { %v773_v57 = vpop.f32.mrf.mxu1 }
 0x391   :  { %v779_v38 = vmul.f32 0.17677669, %v773_v57 }
 0x393   :  { %v783_v19 = vadd.f32 %v781_v25, %v779_v38 }
 0x395   :  { %v786_v62 = vsel %vm785_vm2, %v783_v19, -inf }
 0x396   :  { %787 = vmax.xlane.f32.xlu0 %v786_v62 }
 0x398   :  { %v776_v39 = vpop.f32.mrf.mxu1 }
 0x399   :  { %v780_v34 = vmul.f32 0.17677669, %v776_v39 }
 0x39b   :  { %v784_v46 = vadd.f32 %v782_v16, %v780_v34 }
 0x39d   :  { %v789_v45 = vsel %vm785_vm2, %v784_v46, -inf }
 0x39e   :  { %790 = vmax.xlane.f32.xlu2 %v789_v45 }
 0x409   :  { %v788_v41 = vpop.xlane.xlu0 %787 }
 0x40a   :  { %v792_v42 = vsub.f32 %v783_v19, %v788_v41 }
 0x40c   :  { %v794_v58 = vmul.f32 1.442695, %v792_v42 }
 0x40e   :  { %1397 = vpow2.f32 %v794_v58 }
 0x411   :  { %v791_v52 = vpop.xlane.xlu2 %790 }
 0x412   :  { %v793_v53 = vsub.f32 %v784_v46, %v791_v52 }
 0x414   :  { %v1398_v60 = vpop.eup %1397  ;;  %v796_v17 = vmul.f32 1.442695, %v793_v53 }
 0x415   :  { %v798_v0 = vsel %vm785_vm2, %v1398_v60, 0.0 }
 0x416   :  { %1399 = vpow2.f32 %v796_v17  ;;  %799 = vadd.xlane.f32.xlu1 %v798_v0 }
 0x41c   :  { %v1400_v6 = vpop.eup %1399 }
 0x41d   :  { %v801_v7 = vsel %vm785_vm2, %v1400_v6, 0.0 }
 0x41e   :  { %352 = vadd.xlane.f32.xlu1 %v351_v4  ;;  %802 = vadd.xlane.f32.xlu2 %v801_v7 }
 0x426   :  { %416 = vadd.xlane.f32.xlu2 %v415_v27 }
 0x489   :  { %v800_v28 = vpop.xlane.xlu1 %799 }
 0x48a   :  { %1401 = vrcp.f32 %v800_v28 }
 0x490   :  { %v1402_v29 = vpop.eup %1401 }
 0x491   :  { %v353_v21 = vpop.xlane.xlu1 %352  ;;  %v803_v63 = vpop.xlane.xlu2 %802  ;;  %v806_v30 = vmul.f32 %v1402_v29, %v1398_v60 }
 0x492   :  { %v354_v23 = vrot.slane %v353_v21, 4  ;;  %1403 = vrcp.f32 %v803_v63 }
 0x493   :  { %1079 = vmatmul.msk.f32.vlgmr.msrb.gmra.mxu2 %vm785_vm2, %v806_v30 }
 0x494   :  { %v355_v33 = vadd.f32 %v354_v23, %v353_v21 }
 0x496   :  { %v356_v56 = vrot.slane %v355_v33, 2 }
 0x498   :  { %v1404_v24 = vpop.eup %1403  ;;  %v357_v36 = vadd.f32 %v356_v56, %v355_v33 }
 0x499   :  { %v417_v37 = vpop.xlane.xlu2 %416  ;;  %v807_v57 = vmul.f32 %v1404_v24, %v1400_v6 }
 0x49a   :  { %v418_v25 = vrot.slane %v417_v37, 4  ;;  %v358_v38 = vrot.slane %v357_v36, 1 }
 0x49b   :  { %1080 = vmatmul.msk.f32.gmra.mxu2 %vm785_vm2, %v807_v57 }
 0x49c   :  { %v419_v19 = vadd.f32 %v418_v25, %v417_v37  ;;  %v359_v62 = vadd.f32 %v358_v38, %v357_v36 }
 0x49e   :  { %v420_v39 = vrot.slane %v419_v19, 2  ;;  %1233 = vpush %v359_v62 }
 0x4a0   :  { %v421_v16 = vadd.f32 %v420_v39, %v419_v19 }
 0x4a2   :  { %v422_v34 = vrot.slane %v421_v16, 1 }
 0x4a4   :  { %v423_v46 = vadd.f32 %v422_v34, %v421_v16 }
 0x4a6   :  { %1267 = vpush %v423_v46 }
 0x4cf   :  { %s1234_s1 = spop %1233 }
 0x4d0   :  { %s369_s15 = smul.f32 %s1234_s1, %s1695_s27 }
 0x4d2   :  { %v370_v45 = vstv %s369_s15 }
 0x4d3   :  { %1405 = vrcp.f32 %v370_v45  ;;  %v382_v58 = vand.u32 2147483648, %v370_v45  ;;  %v380_v51 = vand.u32 2147483647, %v370_v45  ;;  %vm376_vm4 = vweird.f32 %v370_v45 }
 0x4d5   :  { %v383_v53 = vor.u32 1.1754944e-38, %v382_v58  ;;  %vm381_vm7 = vcmp.eq.f32.partialorder %v380_v51, 8.507059e+37 }
 0x4d7   :  { %s1268_s16 = spop %1267 }
 0x4d8   :  { %s433_s17 = smul.f32 %s1268_s16, %s1586_s13 }
 0x4d9   :  { %v1406_v41 = vpop.eup %1405 }
 0x4da   :  { %v372_v42 = vmul.f32 %v1406_v41, %v370_v45  ;;  %v434_v43 = vstv %s433_s17  ;;  %vm377_vm3 = vweird.f32 %v1406_v41 }
 0x4db   :  { %1407 = vrcp.f32 %v434_v43  ;;  %vm378_vm5 = vmor %vm376_vm4, %vm377_vm3  ;;  %v444_v54 = vand.u32 2147483647, %v434_v43  ;;  %v446_v9 = vand.u32 2147483648, %v434_v43  ;;  %vm440_vm8 = vweird.f32 %v434_v43 }
 0x4dc   :  { %v373_v44 = vsub.f32 1.0, %v372_v42 }
 0x4dd   :  { %vm1902_vm9 = vcmp.eq.f32.partialorder %v444_v54, 8.507059e+37  ;;  %v447_v2 = vor.u32 1.1754944e-38, %v446_v9 }
 0x4de   :  { %v374_v26 = vmul.f32 %v1406_v41, %v373_v44 }
 0x4e0   :  { %v375_v14 = vadd.f32 %v1406_v41, %v374_v26 }
 0x4e1   :  { %v1408_v52 = vpop.eup %1407 }
 0x4e2   :  { %v379_v12 = vsel %vm378_vm5, %v1406_v41, %v375_v14  ;;  %v436_v47 = vmul.f32 %v1408_v52, %v434_v43  ;;  %vm441_vm10 = vweird.f32 %v1408_v52 }
 0x4e3   :  { %v384_v59 = vsel %vm381_vm7, %v383_v53, %v379_v12  ;;  %vm442_vm11 = vmor %vm440_vm8, %vm441_vm10 }
 0x4e4   :  { %v388_v60 = vmul.f32 %v384_v59, %v1869_v49  ;;  %v437_v17 = vsub.f32 1.0, %v436_v47  ;;  %v387_v0 = vmul.f32 %v384_v59, %v1867_v48  ;;  %v386_v1 = vmul.f32 %v384_v59, %v1863_v15 }
 0x4e5   :  { %v385_v49 = vmul.f32 %v384_v59, %v1861_v40 }
 0x4e6   :  { %v438_v35 = vmul.f32 %v1408_v52, %v437_v17  ;;  %v1259_v3 = vand.u32 2147483647, %v388_v60  ;;  %v1261_v4 = vcvt.f32.s32 %v388_v60  ;;  %v1251_v31 = vand.u32 2147483647, %v387_v0 }
 0x4e7   :  { %v1253_v20 = vcvt.f32.s32 %v387_v0  ;;  %v1243_v5 = vand.u32 2147483647, %v386_v1  ;;  %v1264_v48 = vand.u32 2147483648, %v388_v60  ;;  %v1245_v8 = vcvt.f32.s32 %v386_v1 }
 0x4e8   :  { %v439_v6 = vadd.f32 %v1408_v52, %v438_v35  ;;  %v1262_v7 = vcvt.s32.f32 %v1261_v4  ;;  %vm1908_vm12 = vcmp.lt.f32.partialorder %v1259_v3, 8388608.0  ;;  %vm1912_vm13 = vcmp.lt.f32.partialorder %v1251_v31, 8388608.0 }
 0x4e9   :  { %v1254_v27 = vcvt.s32.f32 %v1253_v20  ;;  %v1256_v28 = vand.u32 2147483648, %v387_v0  ;;  %vm1916_vm14 = vcmp.lt.f32.partialorder %v1243_v5, 8388608.0  ;;  %v1246_v63 = vcvt.s32.f32 %v1245_v8 }
 0x4ea   :  { %v443_v29 = vsel %vm442_vm11, %v1408_v52, %v439_v6  ;;  %v1263_v21 = vand.u32 2147483647, %v1262_v7  ;;  %v1248_v33 = vand.u32 2147483648, %v386_v1  ;;  %v1237_v56 = vcvt.f32.s32 %v385_v49 }
 0x4eb   :  { %v448_v30 = vsel %vm1902_vm9, %v447_v2, %v443_v29  ;;  %v1255_v23 = vand.u32 2147483647, %v1254_v27  ;;  %v1247_v36 = vand.u32 2147483647, %v1246_v63  ;;  %v1235_v37 = vand.u32 2147483647, %v385_v49 }
 0x4ec   :  { %v1265_v24 = vor.u32 %v1264_v48, %v1263_v21  ;;  %v452_v57 = vmul.f32 %v448_v30, %v1889_v32  ;;  %v1238_v38 = vcvt.s32.f32 %v1237_v56  ;;  %v1240_v19 = vand.u32 2147483648, %v385_v49 }
 0x4ed   :  { %v1257_v25 = vor.u32 %v1256_v28, %v1255_v23  ;;  %v451_v62 = vmul.f32 %v448_v30, %v1882_v61  ;;  %v1249_v16 = vor.u32 %v1248_v33, %v1247_v36  ;;  %v450_v46 = vmul.f32 %v448_v30, %v1876_v13 }
 0x4ee   :  { %v1266_v39 = vsel %vm1908_vm12, %v1265_v24, %v388_v60  ;;  %v1295_v34 = vcvt.f32.s32 %v452_v57  ;;  %v1239_v42 = vand.u32 2147483647, %v1238_v38  ;;  %v1293_v43 = vand.u32 2147483647, %v452_v57  ;;  %v1947_v24 = vld [vmem:[%s2101_s8] sm:$0xff] }
 0x4ef   :  { %v1048_v45 = vclamps-f32 %v1266_v39, 1.0  ;;  %v1258_v41 = vsel %vm1912_vm13, %v1257_v25, %v387_v0  ;;  %v1250_v32 = vsel %vm1916_vm14, %v1249_v16, %v386_v1  ;;  %v1287_v26 = vcvt.f32.s32 %v451_v62 }
 0x4f0   :  { %v1296_v44 = vcvt.s32.f32 %v1295_v34  ;;  %v1047_v58 = vclamps-f32 %v1258_v41, 1.0  ;;  %v1241_v61 = vor.u32 %v1240_v19, %v1239_v42  ;;  %vm1236_vm15 = vcmp.lt.f32.partialorder %v1235_v37, 8388608.0  ;;  %v1967_v19 = vld [vmem:[%s2101_s8 + $0x18] sm:$0xff]  ;;  %v1974_v34 = vld [vmem:[%s2101_s8 + $0x20] sm:$0xff]  ;;  %v1981_v42 = vld [vmem:[%s2101_s8 + $0x28] sm:$0xff] }
 0x4f1   :  { %855 = vmatpush.msra.mxu3 %v1048_v45  ;;  %v1298_v14 = vand.u32 2147483648, %v452_v57  ;;  %v1279_v52 = vcvt.f32.s32 %v450_v46  ;;  %v1046_v13 = vclamps-f32 %v1250_v32, 1.0  ;;  %vm1294_vm1 = vcmp.lt.f32.partialorder %v1293_v43, 8388608.0 }
 0x4f2   :  { %v1297_v51 = vand.u32 2147483647, %v1296_v44  ;;  %v1242_v53 = vsel %vm1236_vm15, %v1241_v61, %v385_v49  ;;  %v1288_v54 = vcvt.s32.f32 %v1287_v26  ;;  %v1285_v12 = vand.u32 2147483647, %v451_v62 }
 0x4f3   :  { %856 = vmatpush.msra.mxu3 %v1047_v58  ;;  %v1290_v47 = vand.u32 2147483648, %v451_v62  ;;  %v1280_v59 = vcvt.s32.f32 %v1279_v52  ;;  %v1045_v60 = vclamps-f32 %v1242_v53, 1.0  ;;  %v1277_v0 = vand.u32 2147483647, %v450_v46  ;;  %v1988_v58 = vld [vmem:[%s2101_s8 + $0x30] sm:$0xff] }
 0x4f4   :  { %v1299_v9 = vor.u32 %v1298_v14, %v1297_v51  ;;  %v1289_v17 = vand.u32 2147483647, %v1288_v54  ;;  %v449_v1 = vmul.f32 %v448_v30, %v1874_v10  ;;  %v1282_v35 = vand.u32 2147483648, %v450_v46 }
 0x4f5   :  { %857 = vmatpush.msra.mxu3 %v1046_v13  ;;  %v1281_v2 = vand.u32 2147483647, %v1280_v59  ;;  %vm1286_vm2 = vcmp.lt.f32.partialorder %v1285_v12, 8388608.0  ;;  %vm1278_vm3 = vcmp.lt.f32.partialorder %v1277_v0, 8388608.0  ;;  %v473_v36 = vand.u32 2147483647, %v1947_v24 }
 0x4f6   :  { %v1300_v50 = vsel %vm1294_vm1, %v1299_v9, %v452_v57  ;;  %v1291_v4 = vor.u32 %v1290_v47, %v1289_v17  ;;  %v1271_v31 = vcvt.f32.s32 %v449_v1  ;;  %v1269_v48 = vand.u32 2147483647, %v449_v1  ;;  %v1996_v13 = vld [vmem:[%s2101_s8 + $0x38] sm:$0xff] }
 0x4f7   :  { %858 = vmatpush.msra.mxu3 %v1045_v60  ;;  %v1052_v3 = vclamps-f32 %v1300_v50, 1.0  ;;  %v1283_v20 = vor.u32 %v1282_v35, %v1281_v2  ;;  %v1274_v15 = vand.u32 2147483648, %v449_v1  ;;  %v481_v25 = vsel %vm152_vm6, %v473_v36, 0.0 }
 0x4f8   :  { %v1292_v5 = vsel %vm1286_vm2, %v1291_v4, %v451_v62  ;;  %v1272_v49 = vcvt.s32.f32 %v1271_v31  ;;  %vm1270_vm4 = vcmp.lt.f32.partialorder %v1269_v48, 8388608.0  ;;  %v476_v39 = vand.u32 2147483647, %v1967_v19 }
 0x4f9   :  { %930 = vmatpush.msrb.mxu0 %v1052_v3  ;;  %v1051_v6 = vclamps-f32 %v1292_v5, 1.0  ;;  %v1284_v7 = vsel %vm1278_vm3, %v1283_v20, %v450_v46  ;;  %v477_v45 = vand.u32 2147483647, %v1974_v34  ;;  %v478_v32 = vand.u32 2147483647, %v1981_v42 }
 0x4fa   :  { %v1273_v8 = vand.u32 2147483647, %v1272_v49  ;;  %v1050_v10 = vclamps-f32 %v1284_v7, 1.0  ;;  %v486_v41 = vsel %vm152_vm6, %v476_v39, 0.0  ;;  %v479_v14 = vand.u32 2147483647, %v1988_v58 }
 0x4fb   :  { %931 = vmatpush.msrb.mxu0 %v1051_v6  ;;  %v488_v44 = vsel %vm152_vm6, %v477_v45, 0.0  ;;  %v490_v52 = vsel %vm152_vm6, %v478_v32, 0.0  ;;  %v480_v12 = vand.u32 2147483647, %v1996_v13 }
 0x4fc   :  { %v1275_v11 = vor.u32 %v1274_v15, %v1273_v8  ;;  %v492_v47 = vsel %vm152_vm6, %v479_v14, 0.0 }
 0x4fd   :  { %932 = vmatpush.msrb.mxu0 %v1050_v10 }
 0x4fe   :  { %v1276_v27 = vsel %vm1270_vm4, %v1275_v11, %v449_v1  ;;  %v494_v1 = vsel %vm152_vm6, %v480_v12, 0.0 }
 0x4ff   :  { %v1049_v28 = vclamps-f32 %v1276_v27, 1.0 }
 0x501   :  { %933 = vmatpush.msrb.mxu0 %v1049_v28 }
 0x516   :  { %v831_v29 = vpop.f32.mrf.mxu2 }
 0x517   :  { %1081 = vmatmul.msk.f32.vlgmr.msra.gmra.mxu3 %vm152_vm6, %v831_v29 }
 0x51e   :  { %v834_v21 = vpop.f32.mrf.mxu2 }
 0x51f   :  { %1082 = vmatmul.msk.f32.gmra.mxu3 %vm152_vm6, %v834_v21 }
 0x59a   :  { %v860_v40 = vpop.f32.mrf.mxu3 }
 0x59b   :  { %v1935_v63 = vadd.f32 %v860_v40, %v1687_v18  ;;  %v1952_v18 = vld [vmem:[%s2101_s8 + $0x8] sm:$0xff] }
 0x59c   :  { %v474_v37 = vand.u32 2147483647, %v1952_v18 }
 0x59d   :  { %v868_v30 = vsel %vm152_vm6, %v1935_v63, 0.0 }
 0x59e   :  { %869 = vadd.xlane.f32.xlu1 %v868_v30  ;;  %v482_v38 = vsel %vm152_vm6, %v474_v37, 0.0 }
 0x59f   :  { %v483_v62 = vadd.f32 %v482_v38, %v481_v25 }
 0x5a2   :  { %v863_v23 = vpop.f32.mrf.mxu3 }
 0x5a3   :  { %v1940_v33 = vadd.f32 %v863_v23, %v1691_v22  ;;  %v1959_v22 = vld [vmem:[%s2101_s8 + $0x10] sm:$0xff] }
 0x5a4   :  { %v475_v57 = vand.u32 2147483647, %v1959_v22 }
 0x5a5   :  { %v871_v56 = vsel %vm152_vm6, %v1940_v33, 0.0 }
 0x5a6   :  { %872 = vadd.xlane.f32.xlu2 %v871_v56  ;;  %v484_v16 = vsel %vm152_vm6, %v475_v57, 0.0 }
 0x5a7   :  { %v485_v46 = vadd.f32 %v484_v16, %v483_v62 }
 0x5a9   :  { %v487_v43 = vadd.f32 %v486_v41, %v485_v46 }
 0x5ab   :  { %v489_v26 = vadd.f32 %v488_v44, %v487_v43 }
 0x5ad   :  { %v491_v54 = vadd.f32 %v490_v52, %v489_v26 }
 0x5af   :  { %v493_v17 = vadd.f32 %v492_v47, %v491_v54 }
 0x5b1   :  { %v495_v2 = vadd.f32 %v494_v1, %v493_v17 }
 0x611   :  { %v870_v61 = vpop.xlane.xlu1 %869 }
 0x612   :  { %v874_v51 = vmul.f32 %v870_v61, %v1713_v55 }
 0x614   :  { %v876_v53 = vsub.f32 %v1935_v63, %v874_v51 }
 0x616   :  { %v878_v9 = vmul.f32 %v876_v53, %v876_v53 }
 0x618   :  { %v880_v59 = vsel %vm152_vm6, %v878_v9, 0.0 }
 0x619   :  { %881 = vadd.xlane.f32.xlu1 %v880_v59  ;;  %v873_v60 = vpop.xlane.xlu2 %872 }
 0x61a   :  { %v875_v0 = vmul.f32 %v873_v60, %v1713_v55 }
 0x61c   :  { %v877_v50 = vsub.f32 %v1940_v33, %v875_v0 }
 0x61e   :  { %v879_v35 = vmul.f32 %v877_v50, %v877_v50 }
 0x620   :  { %v883_v3 = vsel %vm152_vm6, %v879_v35, 0.0 }
 0x621   :  { %496 = vadd.xlane.f32.xlu1 %v495_v2  ;;  %884 = vadd.xlane.f32.xlu2 %v883_v3 }
 0x68c   :  { %v882_v4 = vpop.xlane.xlu1 %881 }
 0x68d   :  { %v886_v31 = vmul.f32 %v882_v4, %v1713_v55 }
 0x68f   :  { %v888_v20 = vadd.f32 1e-05, %v886_v31 }
 0x691   :  { %1409 = vrsqrt.f32 %v888_v20  ;;  %vm896_vm7 = vweird.f32 %v888_v20 }
 0x694   :  { %v497_v5 = vpop.xlane.xlu1 %496  ;;  %v885_v49 = vpop.xlane.xlu2 %884 }
 0x695   :  { %v498_v6 = vrot.slane %v497_v5, 4  ;;  %v887_v7 = vmul.f32 %v885_v49, %v1713_v55 }
 0x697   :  { %v1410_v48 = vpop.eup %1409  ;;  %v499_v8 = vadd.f32 %v498_v6, %v497_v5  ;;  %v889_v15 = vadd.f32 1e-05, %v887_v7 }
 0x698   :  { %v891_v10 = vmul.f32 %v1410_v48, %v888_v20  ;;  %vm897_vm5 = vweird.f32 %v1410_v48 }
 0x699   :  { %v500_v11 = vrot.slane %v499_v8, 2  ;;  %1411 = vrsqrt.f32 %v889_v15  ;;  %vm898_vm8 = vmor %vm896_vm7, %vm897_vm5  ;;  %vm906_vm10 = vweird.f32 %v889_v15 }
 0x69a   :  { %v892_v27 = vmul.f32 %v1410_v48, %v891_v10 }
 0x69b   :  { %v501_v28 = vadd.f32 %v500_v11, %v499_v8 }
 0x69c   :  { %v893_v29 = vmul.f32 0.5, %v892_v27 }
 0x69d   :  { %v502_v21 = vrot.slane %v501_v28, 1 }
 0x69e   :  { %v894_v40 = vsub.f32 1.5, %v893_v29 }
 0x69f   :  { %v1412_v30 = vpop.eup %1411  ;;  %v503_v23 = vadd.f32 %v502_v21, %v501_v28 }
 0x6a0   :  { %v895_v56 = vmul.f32 %v1410_v48, %v894_v40  ;;  %v901_v36 = vmul.f32 %v1412_v30, %v889_v15  ;;  %vm907_vm9 = vweird.f32 %v1412_v30 }
 0x6a1   :  { %1301 = vpush %v503_v23  ;;  %vm908_vm11 = vmor %vm906_vm10, %vm907_vm9 }
 0x6a2   :  { %v902_v55 = vmul.f32 %v1412_v30, %v901_v36  ;;  %v899_v37 = vsel %vm898_vm8, %v1410_v48, %v895_v56 }
 0x6a3   :  { %v910_v57 = vmul.f32 %v899_v37, %v876_v53 }
 0x6a4   :  { %v903_v25 = vmul.f32 0.5, %v902_v55 }
 0x6a5   :  { %1083 = vmatmul.msk.f32.vlgmr.msrb.gmra.mxu0 %vm152_vm6, %v910_v57 }
 0x6a6   :  { %v904_v38 = vsub.f32 1.5, %v903_v25 }
 0x6a8   :  { %v905_v62 = vmul.f32 %v1412_v30, %v904_v38 }
 0x6aa   :  { %v909_v39 = vsel %vm908_vm11, %v1412_v30, %v905_v62 }
 0x6ab   :  { %v911_v16 = vmul.f32 %v909_v39, %v877_v50 }
 0x6ad   :  { %1084 = vmatmul.msk.f32.gmra.mxu0 %vm152_vm6, %v911_v16 }
 0x6d2   :  { %s1302_s8 = spop %1301 }
 0x6d3   :  { %s513_s29 = smul.f32 %s1302_s8, %s1586_s13 }
 0x6d5   :  { %v514_v46 = vstv %s513_s29 }
 0x6d6   :  { %1413 = vrcp.f32 %v514_v46  ;;  %v526_v32 = vand.u32 2147483648, %v514_v46  ;;  %v524_v61 = vand.u32 2147483647, %v514_v46  ;;  %vm520_vm13 = vweird.f32 %v514_v46 }
 0x6d8   :  { %v527_v51 = vor.u32 1.1754944e-38, %v526_v32  ;;  %vm525_vm15 = vcmp.eq.f32.partialorder %v524_v61, 8.507059e+37 }
 0x6dc   :  { %v1414_v45 = vpop.eup %1413 }
 0x6dd   :  { %v516_v41 = vmul.f32 %v1414_v45, %v514_v46  ;;  %vm521_vm12 = vweird.f32 %v1414_v45 }
 0x6de   :  { %vm522_vm14 = vmor %vm520_vm13, %vm521_vm12 }
 0x6df   :  { %v517_v43 = vsub.f32 1.0, %v516_v41 }
 0x6e1   :  { %v518_v44 = vmul.f32 %v1414_v45, %v517_v43 }
 0x6e3   :  { %v519_v26 = vadd.f32 %v1414_v45, %v518_v44 }
 0x6e5   :  { %v523_v14 = vsel %vm522_vm14, %v1414_v45, %v519_v26 }
 0x6e6   :  { %v528_v52 = vsel %vm525_vm15, %v527_v51, %v523_v14 }
 0x6e7   :  { %v536_v53 = vmul.f32 %v528_v52, %v1996_v13  ;;  %v535_v54 = vmul.f32 %v528_v52, %v1988_v58  ;;  %v534_v9 = vmul.f32 %v528_v52, %v1981_v42  ;;  %v533_v60 = vmul.f32 %v528_v52, %v1974_v34 }
 0x6e8   :  { %v2016_v1 = vmul.f32 %v528_v52, %v1967_v19  ;;  %v2019_v50 = vmul.f32 %v528_v52, %v1959_v22  ;;  %v2022_v13 = vmul.f32 %v528_v52, %v1952_v18  ;;  %v2025_v42 = vmul.f32 %v528_v52, %v1947_v24 }
 0x6e9   :  { %v1359_v12 = vand.u32 2147483647, %v536_v53  ;;  %v1361_v47 = vcvt.f32.s32 %v536_v53  ;;  %v1351_v59 = vand.u32 2147483647, %v535_v54  ;;  %v1353_v17 = vcvt.f32.s32 %v535_v54 }
 0x6ea   :  { %v1345_v0 = vcvt.f32.s32 %v534_v9  ;;  %v1343_v35 = vand.u32 2147483647, %v534_v9  ;;  %v1364_v58 = vand.u32 2147483648, %v536_v53  ;;  %v1356_v4 = vand.u32 2147483648, %v535_v54 }
 0x6eb   :  { %v1362_v2 = vcvt.s32.f32 %v1361_v47  ;;  %v1354_v3 = vcvt.s32.f32 %v1353_v17  ;;  %vm2027_vm1 = vcmp.lt.f32.partialorder %v1359_v12, 8388608.0  ;;  %vm2031_vm2 = vcmp.lt.f32.partialorder %v1351_v59, 8388608.0 }
 0x6ec   :  { %v1346_v34 = vcvt.s32.f32 %v1345_v0  ;;  %v1337_v20 = vcvt.f32.s32 %v533_v60  ;;  %v1348_v49 = vand.u32 2147483648, %v534_v9  ;;  %v1329_v24 = vcvt.f32.s32 %v2016_v1 }
 0x6ed   :  { %v1363_v19 = vand.u32 2147483647, %v1362_v2  ;;  %v1355_v5 = vand.u32 2147483647, %v1354_v3  ;;  %vm2036_vm3 = vcmp.lt.f32.partialorder %v1343_v35, 8388608.0  ;;  %v1340_v11 = vand.u32 2147483648, %v533_v60 }
 0x6ee   :  { %v1347_v18 = vand.u32 2147483647, %v1346_v34  ;;  %v1335_v48 = vand.u32 2147483647, %v533_v60  ;;  %v1338_v8 = vcvt.s32.f32 %v1337_v20  ;;  %v1330_v27 = vcvt.s32.f32 %v1329_v24 }
 0x6ef   :  { %v1365_v6 = vor.u32 %v1364_v58, %v1363_v19  ;;  %v1357_v15 = vor.u32 %v1356_v4, %v1355_v5  ;;  %v1327_v21 = vand.u32 2147483647, %v2016_v1  ;;  %v1321_v40 = vcvt.f32.s32 %v2019_v50 }
 0x6f0   :  { %v1349_v10 = vor.u32 %v1348_v49, %v1347_v18  ;;  %v1339_v29 = vand.u32 2147483647, %v1338_v8  ;;  %v1331_v56 = vand.u32 2147483647, %v1330_v27  ;;  %v1332_v36 = vand.u32 2147483648, %v2016_v1 }
 0x6f1   :  { %v1366_v28 = vsel %vm2027_vm1, %v1365_v6, %v536_v53  ;;  %v1358_v23 = vsel %vm2031_vm2, %v1357_v15, %v535_v54  ;;  %vm2049_vm4 = vcmp.lt.f32.partialorder %v1335_v48, 8388608.0  ;;  %v1319_v25 = vand.u32 2147483647, %v2019_v50 }
 0x6f2   :  { %v1060_v30 = vclamps-f32 %v1366_v28, 1.0  ;;  %v1350_v55 = vsel %vm2036_vm3, %v1349_v10, %v534_v9  ;;  %v1341_v57 = vor.u32 %v1340_v11, %v1339_v29  ;;  %v1059_v38 = vclamps-f32 %v1358_v23, 1.0 }
 0x6f3   :  { %v1333_v62 = vor.u32 %v1332_v36, %v1331_v56  ;;  %v1322_v39 = vcvt.s32.f32 %v1321_v40  ;;  %v1313_v16 = vcvt.f32.s32 %v2022_v13  ;;  %v1305_v45 = vcvt.f32.s32 %v2025_v42 }
 0x6f4   :  { %973 = vmatpush.msra.mxu1 %v1060_v30  ;;  %v1342_v46 = vsel %vm2049_vm4, %v1341_v57, %v533_v60  ;;  %v1058_v41 = vclamps-f32 %v1350_v55, 1.0  ;;  %vm2058_vm5 = vcmp.lt.f32.partialorder %v1327_v21, 8388608.0  ;;  %v1324_v44 = vand.u32 2147483648, %v2019_v50 }
 0x6f5   :  { %v1323_v32 = vand.u32 2147483647, %v1322_v39  ;;  %v1334_v61 = vsel %vm2058_vm5, %v1333_v62, %v2016_v1  ;;  %vm2066_vm7 = vcmp.lt.f32.partialorder %v1319_v25, 8388608.0  ;;  %v1314_v51 = vcvt.s32.f32 %v1313_v16 }
 0x6f6   :  { %974 = vmatpush.msra.mxu1 %v1059_v38  ;;  %v1306_v14 = vcvt.s32.f32 %v1305_v45  ;;  %v1057_v52 = vclamps-f32 %v1342_v46, 1.0  ;;  %v1311_v54 = vand.u32 2147483647, %v2022_v13  ;;  %v1303_v9 = vand.u32 2147483647, %v2025_v42 }
 0x6f7   :  { %v1325_v53 = vor.u32 %v1324_v44, %v1323_v32  ;;  %v1315_v12 = vand.u32 2147483647, %v1314_v51  ;;  %v1316_v47 = vand.u32 2147483648, %v2022_v13  ;;  %v1308_v60 = vand.u32 2147483648, %v2025_v42 }
 0x6f8   :  { %975 = vmatpush.msra.mxu1 %v1058_v41  ;;  %v1307_v59 = vand.u32 2147483647, %v1306_v14  ;;  %v1056_v17 = vclamps-f32 %v1334_v61, 1.0  ;;  %vm1312_vm8 = vcmp.lt.f32.partialorder %v1311_v54, 8388608.0  ;;  %vm1304_vm9 = vcmp.lt.f32.partialorder %v1303_v9, 8388608.0 }
 0x6f9   :  { %v1326_v0 = vsel %vm2066_vm7, %v1325_v53, %v2019_v50  ;;  %v1317_v1 = vor.u32 %v1316_v47, %v1315_v12 }
 0x6fa   :  { %976 = vmatpush.msra.mxu1 %v1057_v52  ;;  %v1309_v2 = vor.u32 %v1308_v60, %v1307_v59  ;;  %v1055_v35 = vclamps-f32 %v1326_v0, 1.0 }
 0x6fb   :  { %v1318_v58 = vsel %vm1312_vm8, %v1317_v1, %v2022_v13 }
 0x6fc   :  { %977 = vmatpush.msra.mxu1 %v1056_v17  ;;  %v1310_v3 = vsel %vm1304_vm9, %v1309_v2, %v2025_v42  ;;  %v1054_v4 = vclamps-f32 %v1318_v58, 1.0 }
 0x6fd   :  { %v1053_v34 = vclamps-f32 %v1310_v3, 1.0 }
 0x6fe   :  { %978 = vmatpush.msra.mxu1 %v1055_v35 }
 0x700   :  { %979 = vmatpush.msra.mxu1 %v1054_v4 }
 0x702   :  { %980 = vmatpush.msra.mxu1 %v1053_v34 }
 0x722   :  { %v935_v31 = vpop.f32.mrf.mxu0 }
 0x723   :  { %v941_v19 = vmul.f32 %v935_v31, %v935_v31 }
 0x725   :  { %v943_v22 = vmul.f32 %v941_v19, %v935_v31 }
 0x727   :  { %v945_v20 = vmul.f32 0.044715, %v943_v22 }
 0x729   :  { %v947_v50 = vadd.f32 %v945_v20, %v935_v31 }
 0x72a   :  { %v938_v5 = vpop.f32.mrf.mxu0 }
 0x72b   :  { %v949_v18 = vmul.f32 0.7978846, %v947_v50  ;;  %v942_v49 = vmul.f32 %v938_v5, %v938_v5 }
 0x72d   :  { %1415 = vtanh.f32 %v949_v18  ;;  %v944_v24 = vmul.f32 %v942_v49, %v938_v5 }
 0x72f   :  { %v946_v6 = vmul.f32 0.044715, %v944_v24 }
 0x731   :  { %v948_v7 = vadd.f32 %v946_v6, %v938_v5 }
 0x733   :  { %v1416_v13 = vpop.eup %1415  ;;  %v950_v48 = vmul.f32 0.7978846, %v948_v7 }
 0x734   :  { %v953_v42 = vadd.f32 1.0, %v1416_v13 }
 0x735   :  { %1417 = vtanh.f32 %v950_v48 }
 0x736   :  { %v955_v8 = vmul.f32 0.5, %v953_v42 }
 0x738   :  { %v957_v15 = vmul.f32 %v955_v8, %v935_v31 }
 0x73a   :  { %1085 = vmatmul.msk.f32.vlgmr.msra.gmra.mxu1 %vm87_vm0, %v957_v15 }
 0x73b   :  { %v1418_v10 = vpop.eup %1417 }
 0x73c   :  { %v954_v11 = vadd.f32 1.0, %v1418_v10 }
 0x73e   :  { %v956_v27 = vmul.f32 0.5, %v954_v11 }
 0x740   :  { %v958_v28 = vmul.f32 %v956_v27, %v938_v5 }
 0x742   :  { %1086 = vmatmul.msk.f32.gmra.mxu1 %vm87_vm0, %v958_v28 }
 0x7b7   :  { %v982_v29 = vpop.f32.mrf.mxu1 }
 0x7b8   :  { %v988_v21 = vadd.f32 %v982_v29, %v1935_v63 }
 0x7ba   :  { %1087 = vmatmul.msk.f32.vlgmr.msra.gmra.mxu2 %vm152_vm6, %v988_v21 }
 0x7bf   :  { %v985_v40 = vpop.f32.mrf.mxu1 }
 0x7c0   :  { %v989_v30 = vadd.f32 %v985_v40, %v1940_v33 }
 0x7c2   :  { %1088 = vmatmul.msk.f32.gmra.mxu2 %vm152_vm6, %v989_v30 }
 0x83d   :  { %v1013_v23 = vpop.f32.mrf.mxu2 }
 0x83e   :  { %v1019_v56 = vsel %vm87_vm0, %v1013_v23, 0.0 }
 0x83f   :  { %1021 = vst [vmem:[%s2102_s9] sm:$0xff] %v1019_v56 }
 0x845   :  { %v1016_v36 = vpop.f32.mrf.mxu2 }
 0x846   :  { %v1020_v55 = vsel %vm87_vm0, %v1016_v36, 0.0 }
 0x847   :  { %1022 = vst [vmem:[%s2102_s9 + $0x8] sm:$0xff] %v1020_v55 }
 0x848   :  { %1027 = vsyncpa [#allocation3], 1 }
 0x849   :  { %1028 = vsyncpa [#allocation5], 1 }

</bundles_post_ra>
